<compile_context>
chip_gen: v7x
topology: tpu7x:2x2x1
jax: 0.10.0
libtpu: 0.0.40
codegen_flags: <defaults>
</compile_context>

<pallas_src>
import functools

import jax
import jax.numpy as jnp
from jax.experimental import pallas as pl
from jax.experimental.pallas import tpu as pltpu

BN_EPS = 1e-5
LANE = 128


def _round_up(n, m=LANE):
    return ((n + m - 1) // m) * m


# ---------------------------------------------------------------------------
# In-kernel helpers (also reused by the pure-JAX reference)
# ---------------------------------------------------------------------------
def _bn_train(x, gamma=None, beta=None):
    """BatchNorm1d, training mode: batch stats over axis 0, biased variance.
    Matches the PyTorch reference (running-stats update is a side effect that
    does not change the returned outputs, so it is omitted)."""
    mu = jnp.mean(x, axis=0, keepdims=True)
    var = jnp.mean((x - mu) ** 2, axis=0, keepdims=True)
    xn = (x - mu) * jax.lax.rsqrt(var + BN_EPS)
    if gamma is not None:
        xn = xn * gamma + beta
    return xn


def _mm(x, w):
    """x @ W with W pre-transposed to [in, out] and pre-cast to bf16 (one-time,
    host side).  bf16 MXU inputs, f32 accumulation."""
    return jnp.dot(x.astype(jnp.bfloat16), w,
                   preferred_element_type=jnp.float32)


# ---------------------------------------------------------------------------
# Fused SimSiam kernel: encoder(+pool) -> encoder_fc -> predictor, per view.
# ---------------------------------------------------------------------------
def _simsiam_fused_kernel(x_ref, wenc_ref,
                          w1_ref, g1_ref, b1_ref,
                          w2_ref, g2_ref, b2_ref,
                          w3_ref,
                          w4_ref, g4_ref, b4_ref,
                          w5_ref, bias5_ref,
                          p_ref, z_ref,
                          f_ref,
                          *, inv_hw, chunk_b):
    # x_ref:    [B*HWp, C] bf16, one view, NHWC-flattened (row = b*HWp + hw)
    # weights:  [in, out] bf16, lane-padded; BN gamma/beta/bias f32
    # p_ref/z_ref: [B, Dp] f32 ; f_ref: [B, Pp] f32 VMEM scratch
    B = z_ref.shape[0]
    hw_p = x_ref.shape[0] // B
    chunk_rows = chunk_b * hw_p

    # --- synthetic encoder: 1x1 conv + ReLU + global average pool ----------
    # Chunked over whole samples so the [chunk_rows, Pp] intermediate stays a
    # few MiB.  Static slices -> no relayout; hw_p is 8-aligned so the pooling
    # reshape stays on (8,128) tile boundaries.
    # TODO(synk): real base_encoder (ResNet backbone) is external to the
    # wrapper; this synthetic 1x1-conv+ReLU encoder is fused with the spatial
    # mean-pool (== features[-1].mean(dim=[2,3])).  K = C (3-4) under-uses the
    # MXU, but the projector/predictor dominate at real sizes.
    for i in range(B // chunk_b):
        xc = x_ref[i * chunk_rows:(i + 1) * chunk_rows, :]
        h = jnp.maximum(_mm(xc, wenc_ref[...]), 0.0)           # [rows, Pp] f32
        f_ref[i * chunk_b:(i + 1) * chunk_b, :] = (
            jnp.sum(h.reshape(chunk_b, hw_p, h.shape[-1]), axis=1) * inv_hw)

    f = f_ref[...]                                             # [B, Pp] f32

    # --- projector (encoder_fc): (Linear->BN->ReLU) x2 -> Linear -> BN -----
    # Per-view BN batch stats (the PyTorch reference calls encoder_fc(x1) and
    # encoder_fc(x2) separately).
    # TODO(synk): at plane=dim=2048 stream w1/w2/w3 from HBM in K-slabs.
    h1 = jnp.maximum(
        _bn_train(_mm(f, w1_ref[...]), g1_ref[...], b1_ref[...]), 0.0)
    h2 = jnp.maximum(
        _bn_train(_mm(h1, w2_ref[...]), g2_ref[...], b2_ref[...]), 0.0)
    z = _bn_train(_mm(h2, w3_ref[...]))            # final BN: affine=False
    z_ref[...] = z

    # --- predictor: Linear->BN->ReLU -> Linear(+bias) ----------------------
    h4 = jnp.maximum(
        _bn_train(_mm(z, w4_ref[...]), g4_ref[...], b4_ref[...]), 0.0)
    p_ref[...] = _mm(h4, w5_ref[...]) + bias5_ref[...]


# ---------------------------------------------------------------------------
# Host-side wrapper
# ---------------------------------------------------------------------------
def simsiam_forward(images, pparams, *, dim):
    """images: [B, 2, C, H, W] (PyTorch NCHW, two views stacked on axis 1).
    pparams: lane-padded, [in,out]-transposed, bf16 parameters (pad_params).
    dim: true (unpadded) output feature dimension."""
    B, V, C, H, W = images.shape
    assert V == 2
    HW = H * W
    HWp = _round_up(HW, 8)          # sublane-aligned spatial extent

    # NCHW -> [view, B*HWp, C] bf16: keeps the pooled feature axis lane-dense
    # inside the kernel and makes the 1x1 conv a single matmul per chunk.
    # TODO(synk): ingest NHWC/bf16 straight from the data pipeline so this
    # one-time layout+cast copy disappears from the training step.
    x = jnp.transpose(images, (1, 0, 3, 4, 2)).reshape(V, B, HW, C)
    if HWp != HW:
        # zero spatial rows contribute 0 to the pooled sum; pool scales by 1/HW
        x = jnp.pad(x, ((0, 0), (0, 0), (0, HWp - HW), (0, 0)))
    x = x.reshape(V, B * HWp, C).astype(jnp.bfloat16)

    Pp = pparams["w_enc"].shape[1]
    Dp = pparams["w3"].shape[1]
    Hp = pparams["w4"].shape[1]

    weights = (pparams["w_enc"],
               pparams["w1"], pparams["g1"], pparams["b1"],
               pparams["w2"], pparams["g2"], pparams["b2"],
               pparams["w3"],
               pparams["w4"], pparams["g4"], pparams["b4"],
               pparams["w5"], pparams["bias5"])

    def const_spec(a):
        # Constant block index across the 2-view grid + single-buffered: each
        # weight is DMA'd once and held in exactly ONE VMEM buffer (nothing to
        # prefetch, so double-buffering would only waste VMEM).
        return pl.BlockSpec(a.shape, lambda v: (0, 0),
                            pipeline_mode=pl.Buffered(1))

    # Encoder pooling chunk: whole samples, intermediate capped at ~2 MiB.
    chunk_b = max(1, min(B, (2 << 20) // max(1, HWp * Pp * 4)))
    while B % chunk_b:
        chunk_b -= 1
    chunk_rows = chunk_b * HWp

    # VMEM budget from the actual resident footprint (weights single-buffered,
    # I/O blocks double-buffered, pooled-feature scratch, largest live temps)
    # with 1.5x headroom; never below the 32 MiB scoped default, never above
    # what the smallest per-core VMEM can give (v7x: 64 MiB / TensorCore).
    nbytes = lambda a: int(a.size) * a.dtype.itemsize
    resident = (sum(nbytes(w) for w in weights)      # weights, 1 buffer each
                + 2 * (B * HWp * C * 2)              # input block, 2 buffers
                + 2 * 2 * (B * Dp * 4)               # 2 outputs, 2 buffers
                + B * Pp * 4                         # f scratch
                + chunk_rows * Pp * 4                # encoder chunk temp
                + 6 * B * max(Pp, Dp, Hp) * 4)       # projector/predictor temps
    vmem_limit = max(32 << 20, int(resident * 1.5) + (4 << 20))
    try:
        cap = int(pltpu.get_tpu_info().vmem_capacity_bytes)
    except Exception:
        cap = 64 << 20                               # per-TC minimum across gens
    vmem_limit = int(min(vmem_limit, cap - (4 << 20)))

    flops = 2 * V * B * (HW * C * Pp + 2 * Pp * Pp + Pp * Dp
                         + Dp * Hp + Hp * Dp)
    bytes_accessed = (int(x.size) * 2 + sum(nbytes(w) for w in weights)
                      + 2 * V * B * Dp * 4)

    kern = functools.partial(_simsiam_fused_kernel,
                             inv_hw=1.0 / HW, chunk_b=chunk_b)

    out_block = pl.BlockSpec((None, B, Dp), lambda v: (v, 0, 0))
    p_all, z_all = pl.pallas_call(
        kern,
        out_shape=(jax.ShapeDtypeStruct((V, B, Dp), jnp.float32),
                   jax.ShapeDtypeStruct((V, B, Dp), jnp.float32)),
        grid=(V,),
        in_specs=[pl.BlockSpec((None, B * HWp, C), lambda v: (v, 0, 0))]
                 + [const_spec(w) for w in weights],
        out_specs=(out_block, out_block),
        scratch_shapes=[pltpu.VMEM((B, Pp), jnp.float32)],
        compiler_params=pltpu.CompilerParams(
            dimension_semantics=("parallel",),
            vmem_limit_bytes=vmem_limit),
        cost_estimate=pl.CostEstimate(flops=flops, transcendentals=0,
                                      bytes_accessed=bytes_accessed),
    )(x, *weights)

    p1 = p_all[0, :, :dim]
    p2 = p_all[1, :, :dim]
    z1 = jax.lax.stop_gradient(z_all[0, :, :dim])   # .detach()
    z2 = jax.lax.stop_gradient(z_all[1, :, :dim])   # .detach()
    return {"p1": p1, "p2": p2, "z1": z1, "z2": z2}


# ---------------------------------------------------------------------------
# Parameters (deterministic, PyTorch-like shapes; BN gamma=1, beta=0)
# ---------------------------------------------------------------------------
def init_params(key, in_ch, plane, dim, pred_dim):
    ks = jax.random.split(key, 7)
    n = lambda k, s: 0.05 * jax.random.normal(k, s, jnp.float32)
    ones = lambda f: jnp.ones((1, f), jnp.float32)
    zeros = lambda f: jnp.zeros((1, f), jnp.float32)
    return dict(
        w_enc=n(ks[0], (plane, in_ch)),          # synthetic 1x1-conv encoder
        w1=n(ks[1], (plane, plane)), g1=ones(plane), b1=zeros(plane),
        w2=n(ks[2], (plane, plane)), g2=ones(plane), b2=zeros(plane),
        w3=n(ks[3], (dim, plane)),
        w4=n(ks[4], (pred_dim, dim)), g4=ones(pred_dim), b4=zeros(pred_dim),
        w5=n(ks[5], (dim, pred_dim)),
        bias5=n(ks[6], (1, dim)),
    )


def pad_params(p, plane, dim, pred_dim):
    """One-time host-side parameter prep (outside the forward):
      * transpose Linear weights from PyTorch [out, in] to [in, out] so every
        in-kernel matmul is a plain NN MXU contraction (no in-kernel transpose)
      * zero-pad feature dims to multiples of 128 (lane-dense layout)
      * cast matmul weights to bf16 (f32 accumulation happens in-kernel)
    Zero padding (including gamma/beta padded with ZEROS) keeps the real
    (sliced) outputs unchanged: padded lanes stay exactly 0 through BN."""
    Pp, Dp, Hp = _round_up(plane), _round_up(dim), _round_up(pred_dim)

    def wpad(w, rows, cols):            # [out, in] -> padded [in, out] bf16
        wt = jnp.transpose(w)
        wt = jnp.pad(wt, ((0, rows - wt.shape[0]), (0, cols - wt.shape[1])))
        return wt.astype(jnp.bfloat16)

    def vpad(v, cols):                  # BN gamma/beta/bias stay f32
        return jnp.pad(v, ((0, 0), (0, cols - v.shape[1])))

    return dict(
        w_enc=wpad(p["w_enc"], p["w_enc"].shape[1], Pp),       # [C, Pp]
        w1=wpad(p["w1"], Pp, Pp), g1=vpad(p["g1"], Pp), b1=vpad(p["b1"], Pp),
        w2=wpad(p["w2"], Pp, Pp), g2=vpad(p["g2"], Pp), b2=vpad(p["b2"], Pp),
        w3=wpad(p["w3"], Pp, Dp),
        w4=wpad(p["w4"], Dp, Hp), g4=vpad(p["g4"], Hp), b4=vpad(p["b4"], Hp),
        w5=wpad(p["w5"], Hp, Dp),
        bias5=vpad(p["bias5"], Dp),
    )


# ---------------------------------------------------------------------------
# Pure-JAX reference (same bf16-matmul / f32-accumulate math) for a tolerance
# check — bf16 operands mean the result is no longer bit-identical to f32.
# ---------------------------------------------------------------------------
def _reference(images, pparams, dim):
    B, V, C, H, W = images.shape
    HW = H * W
    x = jnp.transpose(images, (1, 0, 3, 4, 2)).reshape(V, B * HW, C)

    out = {}
    for v in range(V):
        h = jnp.maximum(_mm(x[v], pparams["w_enc"]), 0.0)
        f = jnp.sum(h.reshape(B, HW, -1), axis=1) * (1.0 / HW)
        h1 = jnp.maximum(
            _bn_train(_mm(f, pparams["w1"]), pparams["g1"], pparams["b1"]), 0.0)
        h2 = jnp.maximum(
            _bn_train(_mm(h1, pparams["w2"]), pparams["g2"], pparams["b2"]), 0.0)
        z = _bn_train(_mm(h2, pparams["w3"]))
        h4 = jnp.maximum(
            _bn_train(_mm(z, pparams["w4"]), pparams["g4"], pparams["b4"]), 0.0)
        p = _mm(h4, pparams["w5"]) + pparams["bias5"]
        out[f"p{v + 1}"] = p[:, :dim]
        out[f"z{v + 1}"] = z[:, :dim]
    return out


if __name__ == "__main__":
    B, C, H, W = 8, 4, 16, 16
    plane, dim, pred_dim = 32, 32, 16   # toy versions of 2048 / 2048 / 512

    key = jax.random.PRNGKey(0)
    k_img, k_par = jax.random.split(key)
    images = jax.random.normal(k_img, (B, 2, C, H, W), jnp.float32)

    params = init_params(k_par, C, plane, dim, pred_dim)
    pparams = pad_params(params, plane, dim, pred_dim)   # prep once, reuse

    fwd = jax.jit(simsiam_forward, static_argnames=("dim",))
    out = jax.block_until_ready(fwd(images, pparams, dim=dim))

    assert out["p1"].shape == (B, dim)
    assert out["p2"].shape == (B, dim)
    assert out["z1"].shape == (B, dim)
    assert out["z2"].shape == (B, dim)
    for v in out.values():
        assert bool(jnp.all(jnp.isfinite(v)))

    ref = _reference(images, pparams, dim)
    for k in ("p1", "p2", "z1", "z2"):
        err = float(jnp.max(jnp.abs(out[k] - ref[k])))
        assert err < 2e-2, (k, err)

    print("KERNEL_OK")
</pallas_src>

<mosaic_0001>
module attributes {stable_mosaic.version = 11 : i64} {
  func.func @_simsiam_fused_kernel(%arg0: i32, %arg1: memref<1x2048x4xbf16, #tpu.memory_space<vmem>>, %arg2: memref<4x128xbf16, #tpu.memory_space<vmem>>, %arg3: memref<128x128xbf16, #tpu.memory_space<vmem>>, %arg4: memref<1x128xf32, #tpu.memory_space<vmem>>, %arg5: memref<1x128xf32, #tpu.memory_space<vmem>>, %arg6: memref<128x128xbf16, #tpu.memory_space<vmem>>, %arg7: memref<1x128xf32, #tpu.memory_space<vmem>>, %arg8: memref<1x128xf32, #tpu.memory_space<vmem>>, %arg9: memref<128x128xbf16, #tpu.memory_space<vmem>>, %arg10: memref<128x128xbf16, #tpu.memory_space<vmem>>, %arg11: memref<1x128xf32, #tpu.memory_space<vmem>>, %arg12: memref<1x128xf32, #tpu.memory_space<vmem>>, %arg13: memref<128x128xbf16, #tpu.memory_space<vmem>>, %arg14: memref<1x128xf32, #tpu.memory_space<vmem>>, %arg15: memref<1x8x128xf32, #tpu.memory_space<vmem>>, %arg16: memref<1x8x128xf32, #tpu.memory_space<vmem>>, %arg17: memref<8x128xf32, #tpu.memory_space<vmem>>) attributes {dimension_semantics = [#tpu.dimension_semantics<parallel>], iteration_bounds = array<i64: 2>, scalar_prefetch = 0 : i64, scratch_operands = 1 : i64, tpu.core_type = #tpu.core_type<tc>, window_params = [{transform_indices = @transform_0, window_bounds = array<i64: 1, 2048, 4>}, {pipeline_mode = #tpu.pipeline_mode<synchronous>, transform_indices = @transform_1, window_bounds = array<i64: 4, 128>}, {pipeline_mode = #tpu.pipeline_mode<synchronous>, transform_indices = @transform_2, window_bounds = array<i64: 128, 128>}, {pipeline_mode = #tpu.pipeline_mode<synchronous>, transform_indices = @transform_3, window_bounds = array<i64: 1, 128>}, {pipeline_mode = #tpu.pipeline_mode<synchronous>, transform_indices = @transform_4, window_bounds = array<i64: 1, 128>}, {pipeline_mode = #tpu.pipeline_mode<synchronous>, transform_indices = @transform_5, window_bounds = array<i64: 128, 128>}, {pipeline_mode = #tpu.pipeline_mode<synchronous>, transform_indices = @transform_6, window_bounds = array<i64: 1, 128>}, {pipeline_mode = #tpu.pipeline_mode<synchronous>, transform_indices = @transform_7, window_bounds = array<i64: 1, 128>}, {pipeline_mode = #tpu.pipeline_mode<synchronous>, transform_indices = @transform_8, window_bounds = array<i64: 128, 128>}, {pipeline_mode = #tpu.pipeline_mode<synchronous>, transform_indices = @transform_9, window_bounds = array<i64: 128, 128>}, {pipeline_mode = #tpu.pipeline_mode<synchronous>, transform_indices = @transform_10, window_bounds = array<i64: 1, 128>}, {pipeline_mode = #tpu.pipeline_mode<synchronous>, transform_indices = @transform_11, window_bounds = array<i64: 1, 128>}, {pipeline_mode = #tpu.pipeline_mode<synchronous>, transform_indices = @transform_12, window_bounds = array<i64: 128, 128>}, {pipeline_mode = #tpu.pipeline_mode<synchronous>, transform_indices = @transform_13, window_bounds = array<i64: 1, 128>}, {transform_indices = @transform_14, window_bounds = array<i64: 1, 8, 128>}, {transform_indices = @transform_15, window_bounds = array<i64: 1, 8, 128>}]} {
    %c0 = arith.constant 0 : index
    %c0_0 = arith.constant 0 : index
    %c0_1 = arith.constant 0 : index
    %0 = vector.load %arg1[%c0, %c0_0, %c0_1] : memref<1x2048x4xbf16, #tpu.memory_space<vmem>>, vector<1x2048x4xbf16>
    %1 = vector.shape_cast %0 : vector<1x2048x4xbf16> to vector<2048x4xbf16>
    %c0_2 = arith.constant 0 : index
    %c0_3 = arith.constant 0 : index
    %2 = vector.load %arg2[%c0_2, %c0_3] : memref<4x128xbf16, #tpu.memory_space<vmem>>, vector<4x128xbf16>
    %cst = arith.constant dense<0.000000e+00> : vector<2048x128xf32>
    %3 = tpu.matmul %1, %2, %cst {dimension_numbers = #tpu.dot_dimension_numbers<[1], [0], [0], [1], [0, 0, 1, 1], [], []>} : vector<2048x4xbf16>, vector<4x128xbf16>, vector<2048x128xf32> -> vector<2048x128xf32>
    %cst_4 = arith.constant 0.000000e+00 : f32
    %4 = vector.broadcast %cst_4 : f32 to vector<2048x128xf32>
    %5 = arith.maximumf %3, %4 : vector<2048x128xf32>
    %6 = vector.shape_cast %5 : vector<2048x128xf32> to vector<8x256x128xf32>
    %cst_5 = arith.constant dense<0.000000e+00> : vector<8x128xf32>
    %7 = vector.multi_reduction <add>, %6, %cst_5 [1] : vector<8x256x128xf32> to vector<8x128xf32>
    %cst_6 = arith.constant 3.906250e-03 : f32
    %8 = vector.broadcast %cst_6 : f32 to vector<8x128xf32>
    %9 = arith.mulf %7, %8 : vector<8x128xf32>
    %c0_7 = arith.constant 0 : index
    %c0_8 = arith.constant 0 : index
    %10 = vector.load %arg17[%c0_7, %c0_8] : memref<8x128xf32, #tpu.memory_space<vmem>>, vector<8x128xf32>
    tpu.vector_store %arg17[%c0_7, %c0_8], %9 {strides = array<i32>} : memref<8x128xf32, #tpu.memory_space<vmem>>, vector<8x128xf32>,
    %c0_9 = arith.constant 0 : index
    %c0_10 = arith.constant 0 : index
    %11 = vector.load %arg17[%c0_9, %c0_10] : memref<8x128xf32, #tpu.memory_space<vmem>>, vector<8x128xf32>
    %c0_11 = arith.constant 0 : index
    %c0_12 = arith.constant 0 : index
    %12 = vector.load %arg3[%c0_11, %c0_12] : memref<128x128xbf16, #tpu.memory_space<vmem>>, vector<128x128xbf16>
    %13 = arith.truncf %11 : vector<8x128xf32> to vector<8x128xbf16>
    %cst_13 = arith.constant dense<0.000000e+00> : vector<8x128xf32>
    %14 = tpu.matmul %13, %12, %cst_13 {dimension_numbers = #tpu.dot_dimension_numbers<[1], [0], [0], [1], [0, 0, 1, 1], [], []>} : vector<8x128xbf16>, vector<128x128xbf16>, vector<8x128xf32> -> vector<8x128xf32>
    %c0_14 = arith.constant 0 : index
    %c0_15 = arith.constant 0 : index
    %15 = vector.load %arg4[%c0_14, %c0_15] : memref<1x128xf32, #tpu.memory_space<vmem>>, vector<1x128xf32>
    %c0_16 = arith.constant 0 : index
    %c0_17 = arith.constant 0 : index
    %16 = vector.load %arg5[%c0_16, %c0_17] : memref<1x128xf32, #tpu.memory_space<vmem>>, vector<1x128xf32>
    %cst_18 = arith.constant dense<0.000000e+00> : vector<128xf32>
    %17 = vector.multi_reduction <add>, %14, %cst_18 [0] : vector<8x128xf32> to vector<128xf32>
    %18 = vector.shape_cast %17 : vector<128xf32> to vector<1x128xf32>
    %cst_19 = arith.constant 8.000000e+00 : f32
    %19 = vector.broadcast %cst_19 : f32 to vector<1x128xf32>
    %20 = arith.divf %18, %19 : vector<1x128xf32>
    %21 = vector.broadcast %20 : vector<1x128xf32> to vector<8x128xf32>
    %22 = arith.subf %14, %21 : vector<8x128xf32>
    %23 = arith.mulf %22, %22 : vector<8x128xf32>
    %cst_20 = arith.constant dense<0.000000e+00> : vector<128xf32>
    %24 = vector.multi_reduction <add>, %23, %cst_20 [0] : vector<8x128xf32> to vector<128xf32>
    %25 = vector.shape_cast %24 : vector<128xf32> to vector<1x128xf32>
    %cst_21 = arith.constant 8.000000e+00 : f32
    %26 = vector.broadcast %cst_21 : f32 to vector<1x128xf32>
    %27 = arith.divf %25, %26 : vector<1x128xf32>
    %28 = vector.broadcast %20 : vector<1x128xf32> to vector<8x128xf32>
    %29 = arith.subf %14, %28 : vector<8x128xf32>
    %cst_22 = arith.constant 9.99999974E-6 : f32
    %30 = vector.broadcast %cst_22 : f32 to vector<1x128xf32>
    %31 = arith.addf %27, %30 : vector<1x128xf32>
    %32 = math.rsqrt %31 : vector<1x128xf32>
    %33 = vector.broadcast %32 : vector<1x128xf32> to vector<8x128xf32>
    %34 = arith.mulf %29, %33 : vector<8x128xf32>
    %35 = vector.broadcast %15 : vector<1x128xf32> to vector<8x128xf32>
    %36 = arith.mulf %34, %35 : vector<8x128xf32>
    %37 = vector.broadcast %16 : vector<1x128xf32> to vector<8x128xf32>
    %38 = arith.addf %36, %37 : vector<8x128xf32>
    %cst_23 = arith.constant 0.000000e+00 : f32
    %39 = vector.broadcast %cst_23 : f32 to vector<8x128xf32>
    %40 = arith.maximumf %38, %39 : vector<8x128xf32>
    %c0_24 = arith.constant 0 : index
    %c0_25 = arith.constant 0 : index
    %41 = vector.load %arg6[%c0_24, %c0_25] : memref<128x128xbf16, #tpu.memory_space<vmem>>, vector<128x128xbf16>
    %42 = arith.truncf %40 : vector<8x128xf32> to vector<8x128xbf16>
    %cst_26 = arith.constant dense<0.000000e+00> : vector<8x128xf32>
    %43 = tpu.matmul %42, %41, %cst_26 {dimension_numbers = #tpu.dot_dimension_numbers<[1], [0], [0], [1], [0, 0, 1, 1], [], []>} : vector<8x128xbf16>, vector<128x128xbf16>, vector<8x128xf32> -> vector<8x128xf32>
    %c0_27 = arith.constant 0 : index
    %c0_28 = arith.constant 0 : index
    %44 = vector.load %arg7[%c0_27, %c0_28] : memref<1x128xf32, #tpu.memory_space<vmem>>, vector<1x128xf32>
    %c0_29 = arith.constant 0 : index
    %c0_30 = arith.constant 0 : index
    %45 = vector.load %arg8[%c0_29, %c0_30] : memref<1x128xf32, #tpu.memory_space<vmem>>, vector<1x128xf32>
    %cst_31 = arith.constant dense<0.000000e+00> : vector<128xf32>
    %46 = vector.multi_reduction <add>, %43, %cst_31 [0] : vector<8x128xf32> to vector<128xf32>
    %47 = vector.shape_cast %46 : vector<128xf32> to vector<1x128xf32>
    %cst_32 = arith.constant 8.000000e+00 : f32
    %48 = vector.broadcast %cst_32 : f32 to vector<1x128xf32>
    %49 = arith.divf %47, %48 : vector<1x128xf32>
    %50 = vector.broadcast %49 : vector<1x128xf32> to vector<8x128xf32>
    %51 = arith.subf %43, %50 : vector<8x128xf32>
    %52 = arith.mulf %51, %51 : vector<8x128xf32>
    %cst_33 = arith.constant dense<0.000000e+00> : vector<128xf32>
    %53 = vector.multi_reduction <add>, %52, %cst_33 [0] : vector<8x128xf32> to vector<128xf32>
    %54 = vector.shape_cast %53 : vector<128xf32> to vector<1x128xf32>
    %cst_34 = arith.constant 8.000000e+00 : f32
    %55 = vector.broadcast %cst_34 : f32 to vector<1x128xf32>
    %56 = arith.divf %54, %55 : vector<1x128xf32>
    %57 = vector.broadcast %49 : vector<1x128xf32> to vector<8x128xf32>
    %58 = arith.subf %43, %57 : vector<8x128xf32>
    %cst_35 = arith.constant 9.99999974E-6 : f32
    %59 = vector.broadcast %cst_35 : f32 to vector<1x128xf32>
    %60 = arith.addf %56, %59 : vector<1x128xf32>
    %61 = math.rsqrt %60 : vector<1x128xf32>
    %62 = vector.broadcast %61 : vector<1x128xf32> to vector<8x128xf32>
    %63 = arith.mulf %58, %62 : vector<8x128xf32>
    %64 = vector.broadcast %44 : vector<1x128xf32> to vector<8x128xf32>
    %65 = arith.mulf %63, %64 : vector<8x128xf32>
    %66 = vector.broadcast %45 : vector<1x128xf32> to vector<8x128xf32>
    %67 = arith.addf %65, %66 : vector<8x128xf32>
    %cst_36 = arith.constant 0.000000e+00 : f32
    %68 = vector.broadcast %cst_36 : f32 to vector<8x128xf32>
    %69 = arith.maximumf %67, %68 : vector<8x128xf32>
    %c0_37 = arith.constant 0 : index
    %c0_38 = arith.constant 0 : index
    %70 = vector.load %arg9[%c0_37, %c0_38] : memref<128x128xbf16, #tpu.memory_space<vmem>>, vector<128x128xbf16>
    %71 = arith.truncf %69 : vector<8x128xf32> to vector<8x128xbf16>
    %cst_39 = arith.constant dense<0.000000e+00> : vector<8x128xf32>
    %72 = tpu.matmul %71, %70, %cst_39 {dimension_numbers = #tpu.dot_dimension_numbers<[1], [0], [0], [1], [0, 0, 1, 1], [], []>} : vector<8x128xbf16>, vector<128x128xbf16>, vector<8x128xf32> -> vector<8x128xf32>
    %cst_40 = arith.constant dense<0.000000e+00> : vector<128xf32>
    %73 = vector.multi_reduction <add>, %72, %cst_40 [0] : vector<8x128xf32> to vector<128xf32>
    %74 = vector.shape_cast %73 : vector<128xf32> to vector<1x128xf32>
    %cst_41 = arith.constant 8.000000e+00 : f32
    %75 = vector.broadcast %cst_41 : f32 to vector<1x128xf32>
    %76 = arith.divf %74, %75 : vector<1x128xf32>
    %77 = vector.broadcast %76 : vector<1x128xf32> to vector<8x128xf32>
    %78 = arith.subf %72, %77 : vector<8x128xf32>
    %79 = arith.mulf %78, %78 : vector<8x128xf32>
    %cst_42 = arith.constant dense<0.000000e+00> : vector<128xf32>
    %80 = vector.multi_reduction <add>, %79, %cst_42 [0] : vector<8x128xf32> to vector<128xf32>
    %81 = vector.shape_cast %80 : vector<128xf32> to vector<1x128xf32>
    %cst_43 = arith.constant 8.000000e+00 : f32
    %82 = vector.broadcast %cst_43 : f32 to vector<1x128xf32>
    %83 = arith.divf %81, %82 : vector<1x128xf32>
    %84 = vector.broadcast %76 : vector<1x128xf32> to vector<8x128xf32>
    %85 = arith.subf %72, %84 : vector<8x128xf32>
    %cst_44 = arith.constant 9.99999974E-6 : f32
    %86 = vector.broadcast %cst_44 : f32 to vector<1x128xf32>
    %87 = arith.addf %83, %86 : vector<1x128xf32>
    %88 = math.rsqrt %87 : vector<1x128xf32>
    %89 = vector.broadcast %88 : vector<1x128xf32> to vector<8x128xf32>
    %90 = arith.mulf %85, %89 : vector<8x128xf32>
    %c0_45 = arith.constant 0 : index
    %c0_46 = arith.constant 0 : index
    %c0_47 = arith.constant 0 : index
    %91 = vector.load %arg16[%c0_45, %c0_46, %c0_47] : memref<1x8x128xf32, #tpu.memory_space<vmem>>, vector<1x8x128xf32>
    %92 = vector.shape_cast %91 : vector<1x8x128xf32> to vector<8x128xf32>
    %93 = vector.shape_cast %90 : vector<8x128xf32> to vector<1x8x128xf32>
    tpu.vector_store %arg16[%c0_45, %c0_46, %c0_47], %93 {strides = array<i32>} : memref<1x8x128xf32, #tpu.memory_space<vmem>>, vector<1x8x128xf32>,
    %c0_48 = arith.constant 0 : index
    %c0_49 = arith.constant 0 : index
    %94 = vector.load %arg10[%c0_48, %c0_49] : memref<128x128xbf16, #tpu.memory_space<vmem>>, vector<128x128xbf16>
    %95 = arith.truncf %90 : vector<8x128xf32> to vector<8x128xbf16>
    %cst_50 = arith.constant dense<0.000000e+00> : vector<8x128xf32>
    %96 = tpu.matmul %95, %94, %cst_50 {dimension_numbers = #tpu.dot_dimension_numbers<[1], [0], [0], [1], [0, 0, 1, 1], [], []>} : vector<8x128xbf16>, vector<128x128xbf16>, vector<8x128xf32> -> vector<8x128xf32>
    %c0_51 = arith.constant 0 : index
    %c0_52 = arith.constant 0 : index
    %97 = vector.load %arg11[%c0_51, %c0_52] : memref<1x128xf32, #tpu.memory_space<vmem>>, vector<1x128xf32>
    %c0_53 = arith.constant 0 : index
    %c0_54 = arith.constant 0 : index
    %98 = vector.load %arg12[%c0_53, %c0_54] : memref<1x128xf32, #tpu.memory_space<vmem>>, vector<1x128xf32>
    %cst_55 = arith.constant dense<0.000000e+00> : vector<128xf32>
    %99 = vector.multi_reduction <add>, %96, %cst_55 [0] : vector<8x128xf32> to vector<128xf32>
    %100 = vector.shape_cast %99 : vector<128xf32> to vector<1x128xf32>
    %cst_56 = arith.constant 8.000000e+00 : f32
    %101 = vector.broadcast %cst_56 : f32 to vector<1x128xf32>
    %102 = arith.divf %100, %101 : vector<1x128xf32>
    %103 = vector.broadcast %102 : vector<1x128xf32> to vector<8x128xf32>
    %104 = arith.subf %96, %103 : vector<8x128xf32>
    %105 = arith.mulf %104, %104 : vector<8x128xf32>
    %cst_57 = arith.constant dense<0.000000e+00> : vector<128xf32>
    %106 = vector.multi_reduction <add>, %105, %cst_57 [0] : vector<8x128xf32> to vector<128xf32>
    %107 = vector.shape_cast %106 : vector<128xf32> to vector<1x128xf32>
    %cst_58 = arith.constant 8.000000e+00 : f32
    %108 = vector.broadcast %cst_58 : f32 to vector<1x128xf32>
    %109 = arith.divf %107, %108 : vector<1x128xf32>
    %110 = vector.broadcast %102 : vector<1x128xf32> to vector<8x128xf32>
    %111 = arith.subf %96, %110 : vector<8x128xf32>
    %cst_59 = arith.constant 9.99999974E-6 : f32
    %112 = vector.broadcast %cst_59 : f32 to vector<1x128xf32>
    %113 = arith.addf %109, %112 : vector<1x128xf32>
    %114 = math.rsqrt %113 : vector<1x128xf32>
    %115 = vector.broadcast %114 : vector<1x128xf32> to vector<8x128xf32>
    %116 = arith.mulf %111, %115 : vector<8x128xf32>
    %117 = vector.broadcast %97 : vector<1x128xf32> to vector<8x128xf32>
    %118 = arith.mulf %116, %117 : vector<8x128xf32>
    %119 = vector.broadcast %98 : vector<1x128xf32> to vector<8x128xf32>
    %120 = arith.addf %118, %119 : vector<8x128xf32>
    %cst_60 = arith.constant 0.000000e+00 : f32
    %121 = vector.broadcast %cst_60 : f32 to vector<8x128xf32>
    %122 = arith.maximumf %120, %121 : vector<8x128xf32>
    %c0_61 = arith.constant 0 : index
    %c0_62 = arith.constant 0 : index
    %123 = vector.load %arg13[%c0_61, %c0_62] : memref<128x128xbf16, #tpu.memory_space<vmem>>, vector<128x128xbf16>
    %124 = arith.truncf %122 : vector<8x128xf32> to vector<8x128xbf16>
    %cst_63 = arith.constant dense<0.000000e+00> : vector<8x128xf32>
    %125 = tpu.matmul %124, %123, %cst_63 {dimension_numbers = #tpu.dot_dimension_numbers<[1], [0], [0], [1], [0, 0, 1, 1], [], []>} : vector<8x128xbf16>, vector<128x128xbf16>, vector<8x128xf32> -> vector<8x128xf32>
    %c0_64 = arith.constant 0 : index
    %c0_65 = arith.constant 0 : index
    %126 = vector.load %arg14[%c0_64, %c0_65] : memref<1x128xf32, #tpu.memory_space<vmem>>, vector<1x128xf32>
    %127 = vector.broadcast %126 : vector<1x128xf32> to vector<8x128xf32>
    %128 = arith.addf %125, %127 : vector<8x128xf32>
    %c0_66 = arith.constant 0 : index
    %c0_67 = arith.constant 0 : index
    %c0_68 = arith.constant 0 : index
    %129 = vector.load %arg15[%c0_66, %c0_67, %c0_68] : memref<1x8x128xf32, #tpu.memory_space<vmem>>, vector<1x8x128xf32>
    %130 = vector.shape_cast %129 : vector<1x8x128xf32> to vector<8x128xf32>
    %131 = vector.shape_cast %128 : vector<8x128xf32> to vector<1x8x128xf32>
    tpu.vector_store %arg15[%c0_66, %c0_67, %c0_68], %131 {strides = array<i32>} : memref<1x8x128xf32, #tpu.memory_space<vmem>>, vector<1x8x128xf32>,
    return
  }
  func.func @transform_0(%arg0: i32) -> (i32, i32, i32) {
    %c0_i32 = arith.constant 0 : i32
    %c0_i32_0 = arith.constant 0 : i32
    %c0_i32_1 = arith.constant 0 : i32
    return %arg0, %c0_i32, %c0_i32_0 : i32, i32, i32
  }
  func.func @transform_1(%arg0: i32) -> (i32, i32) {
    %c0_i32 = arith.constant 0 : i32
    %c0_i32_0 = arith.constant 0 : i32
    %c0_i32_1 = arith.constant 0 : i32
    return %c0_i32, %c0_i32_0 : i32, i32
  }
  func.func @transform_2(%arg0: i32) -> (i32, i32) {
    %c0_i32 = arith.constant 0 : i32
    %c0_i32_0 = arith.constant 0 : i32
    %c0_i32_1 = arith.constant 0 : i32
    return %c0_i32, %c0_i32_0 : i32, i32
  }
  func.func @transform_3(%arg0: i32) -> (i32, i32) {
    %c0_i32 = arith.constant 0 : i32
    %c0_i32_0 = arith.constant 0 : i32
    %c0_i32_1 = arith.constant 0 : i32
    return %c0_i32, %c0_i32_0 : i32, i32
  }
  func.func @transform_4(%arg0: i32) -> (i32, i32) {
    %c0_i32 = arith.constant 0 : i32
    %c0_i32_0 = arith.constant 0 : i32
    %c0_i32_1 = arith.constant 0 : i32
    return %c0_i32, %c0_i32_0 : i32, i32
  }
  func.func @transform_5(%arg0: i32) -> (i32, i32) {
    %c0_i32 = arith.constant 0 : i32
    %c0_i32_0 = arith.constant 0 : i32
    %c0_i32_1 = arith.constant 0 : i32
    return %c0_i32, %c0_i32_0 : i32, i32
  }
  func.func @transform_6(%arg0: i32) -> (i32, i32) {
    %c0_i32 = arith.constant 0 : i32
    %c0_i32_0 = arith.constant 0 : i32
    %c0_i32_1 = arith.constant 0 : i32
    return %c0_i32, %c0_i32_0 : i32, i32
  }
  func.func @transform_7(%arg0: i32) -> (i32, i32) {
    %c0_i32 = arith.constant 0 : i32
    %c0_i32_0 = arith.constant 0 : i32
    %c0_i32_1 = arith.constant 0 : i32
    return %c0_i32, %c0_i32_0 : i32, i32
  }
  func.func @transform_8(%arg0: i32) -> (i32, i32) {
    %c0_i32 = arith.constant 0 : i32
    %c0_i32_0 = arith.constant 0 : i32
    %c0_i32_1 = arith.constant 0 : i32
    return %c0_i32, %c0_i32_0 : i32, i32
  }
  func.func @transform_9(%arg0: i32) -> (i32, i32) {
    %c0_i32 = arith.constant 0 : i32
    %c0_i32_0 = arith.constant 0 : i32
    %c0_i32_1 = arith.constant 0 : i32
    return %c0_i32, %c0_i32_0 : i32, i32
  }
  func.func @transform_10(%arg0: i32) -> (i32, i32) {
    %c0_i32 = arith.constant 0 : i32
    %c0_i32_0 = arith.constant 0 : i32
    %c0_i32_1 = arith.constant 0 : i32
    return %c0_i32, %c0_i32_0 : i32, i32
  }
  func.func @transform_11(%arg0: i32) -> (i32, i32) {
    %c0_i32 = arith.constant 0 : i32
    %c0_i32_0 = arith.constant 0 : i32
    %c0_i32_1 = arith.constant 0 : i32
    return %c0_i32, %c0_i32_0 : i32, i32
  }
  func.func @transform_12(%arg0: i32) -> (i32, i32) {
    %c0_i32 = arith.constant 0 : i32
    %c0_i32_0 = arith.constant 0 : i32
    %c0_i32_1 = arith.constant 0 : i32
    return %c0_i32, %c0_i32_0 : i32, i32
  }
  func.func @transform_13(%arg0: i32) -> (i32, i32) {
    %c0_i32 = arith.constant 0 : i32
    %c0_i32_0 = arith.constant 0 : i32
    %c0_i32_1 = arith.constant 0 : i32
    return %c0_i32, %c0_i32_0 : i32, i32
  }
  func.func @transform_14(%arg0: i32) -> (i32, i32, i32) {
    %c0_i32 = arith.constant 0 : i32
    %c0_i32_0 = arith.constant 0 : i32
    %c0_i32_1 = arith.constant 0 : i32
    return %arg0, %c0_i32, %c0_i32_0 : i32, i32, i32
  }
  func.func @transform_15(%arg0: i32) -> (i32, i32, i32) {
    %c0_i32 = arith.constant 0 : i32
    %c0_i32_0 = arith.constant 0 : i32
    %c0_i32_1 = arith.constant 0 : i32
    return %arg0, %c0_i32, %c0_i32_0 : i32, i32, i32
  }
}

</mosaic_0001>

<bundles_post_ra>
// kernel: simsiam_forward.1
= control target key start
LH: loop header
LB: loop body
LE: loop exit
PB: predicated region body
PF: predicated region fallthrough
CT: control target
= control target key end

     0   :  { %s5306_s18 = smov 0   ;;  %s5894_s0 = inlined_call_operand.vmem [shape: bf16[2,2048,4], index: 0, kind: input, shape index: {}]   ;;  %s5895_s1 = inlined_call_operand.vmem [shape: bf16[4,128], index: 1, kind: input, shape index: {}]   ;;  %s5896_s2 = inlined_call_operand.vmem [shape: bf16[128,128], index: 2, kind: input, shape index: {}]   ;;  %s5897_s3 = inlined_call_operand.vmem [shape: f32[1,128], index: 3, kind: input, shape index: {}]   ;;  %s5898_s4 = inlined_call_operand.vmem [shape: f32[1,128], index: 4, kind: input, shape index: {}]   ;;  %s5899_s5 = inlined_call_operand.vmem [shape: bf16[128,128], index: 5, kind: input, shape index: {}]   ;;  %s5900_s6 = inlined_call_operand.vmem [shape: f32[1,128], index: 6, kind: input, shape index: {}]   ;;  %s5901_s7 = inlined_call_operand.vmem [shape: f32[1,128], index: 7, kind: input, shape index: {}]   ;;  %s5902_s8 = inlined_call_operand.vmem [shape: bf16[128,128], index: 8, kind: input, shape index: {}]   ;;  %s5903_s9 = inlined_call_operand.vmem [shape: bf16[128,128], index: 9, kind: input, shape index: {}]   ;;  %s5904_s10 = inlined_call_operand.vmem [shape: f32[1,128], index: 10, kind: input, shape index: {}]   ;;  %s5905_s11 = inlined_call_operand.vmem [shape: f32[1,128], index: 11, kind: input, shape index: {}]   ;;  %s5906_s12 = inlined_call_operand.vmem [shape: bf16[128,128], index: 12, kind: input, shape index: {}]   ;;  %s5907_s13 = inlined_call_operand.vmem [shape: f32[1,128], index: 13, kind: input, shape index: {}]   ;;  %s5908_s14 = inlined_call_operand.vmem [shape: f32[2,8,128], index: 14, kind: output, shape index: {0}]   ;;  %s5909_s15 = inlined_call_operand.vmem [shape: f32[2,8,128], index: 15, kind: output, shape index: {1}]  }
   0x1 LB: > { %s4179_s19 = sadd.s32 4294967295, %s5222_s18   ;;  %p4183_p0 = scmp.ge.s32.totalorder %s5222_s18, 1  ;;  %s5222_s18 = sphi %s5306_s18, %s26_s18  }
   0x2   : > { %p440_p1 = scmp.lt.s32.totalorder %s5222_s18, 3 }
   0x4   : > { %p441_p2 = pnand %p4183_p0, %p440_p1 }
   0x5   : > { %v761_v0 = vld [vmem:[%s5895_s1] sm:$0x3] (!%p441_p2)  ;;  %vm1787_vm0 = vcmask (!%p441_p2), 1041408   ;;  %p491_p3 = scmp.lt.s32.totalorder (!%p441_p2), %s4179_s19, 1  ;;  %vm1402_vm1 = vcmask (!%p441_p2), 31744   ;;  %vm3416_vm2 = vcmask (!%p441_p2), 1041409  }
   0x6   : > { %444 = sbr.rel (%p441_p2) target bundleno = 1913 (0x779), region = 76  ;;  %5028 = vmatprep.subr.msk.bf16.mxu0 (!%p441_p2), %vm1787_vm0, %v761_v0  ;;  %v1789_v1 = vsel (!%p441_p2), %vm1787_vm0, %v761_v0, 0  ;;  %5029 = vmatprep.subr.msk.bf16.mxu1 (!%p441_p2), %vm1787_vm0, %v761_v0  ;;  %vm3418_vm3 = vcmask (!%p441_p2), 1042434   ;;  %vm5225_vm4 = vmmov (!%p441_p2), 0   ;;  %vm3420_vm5 = vcmask (!%p441_p2), 1043459  }
   0x7   : > { %4669 = vmatpush3.bf16.msra.mxu0 (!%p441_p2), %v1789_v1  ;;  %5027 = vmatpush3.bf16.msra.mxu1 (!%p441_p2), %v1789_v1  ;;  %vm3422_vm6 = vcmask (!%p441_p2), 1044484   ;;  %vm3424_vm7 = vcmask (!%p441_p2), 1045509   ;;  %vm3426_vm8 = vcmask (!%p441_p2), 1046534   ;;  %vm3428_vm9 = vcmask (!%p441_p2), 1047559  }
   0xd   : > { %s5911_s19 = smov (!%p491_p3, %s4179_s19), 1 }
   0xe   : > { %s4493_s22 = sshll.u32 %s5911_s19, 10  ;;  %s4186_s20 = sshll.u32 %s5911_s19, 3 }
   0xf   : > { %s5323_s25 = scalar_lea.vmem %s5894_s0, %s4493_s22  ;;  %s503_s23 = scalar_lea.vmem %s5909_s15, %s4186_s20 }
  0x10   : > { %v5040_v2 = vld [vmem:[%s5323_s25] sm:$0xff]   ;;  %v5041_v3 = vld [vmem:[%s5323_s25 + $0x8] sm:$0xff]   ;;  %v5042_v4 = vld [vmem:[%s5323_s25 + $0x10] sm:$0xff]   ;;  %s499_s24 = scalar_lea.vmem %s5908_s14, %s4186_s20 }
  0x11   : > { %4670 = vmatprep.mubr.msk.bf16.mxu0 %vm1402_vm1, %v5040_v2  ;;  %v5043_v5 = vld [vmem:[%s5323_s25 + $0x18] sm:$0xff]   ;;  %v5044_v6 = vld [vmem:[%s5323_s25 + $0x20] sm:$0xff]   ;;  %v5045_v7 = vld [vmem:[%s5323_s25 + $0x28] sm:$0xff]  }
  0x12   : > { %4671 = vmatmul.mubr.msk.bf16.vlgmr.msra.gmra.mrb[0].mxu0 %vm1402_vm1, %v5041_v3  ;;  %v5046_v8 = vld [vmem:[%s5323_s25 + $0x30] sm:$0xff]   ;;  %v5047_v9 = vld [vmem:[%s5323_s25 + $0x38] sm:$0xff]   ;;  %v5048_v10 = vld [vmem:[%s5323_s25 + $0x40] sm:$0xff]  }
  0x13   : > { %4674 = vmatprep.mubr.msk.bf16.mxu0 %vm1402_vm1, %v5042_v4  ;;  %v5049_v11 = vld [vmem:[%s5323_s25 + $0x48] sm:$0xff]   ;;  %v5050_v12 = vld [vmem:[%s5323_s25 + $0x50] sm:$0xff]   ;;  %v5051_v13 = vld [vmem:[%s5323_s25 + $0x58] sm:$0xff]  }
  0x14   : > { %v5052_v14 = vld [vmem:[%s5323_s25 + $0x60] sm:$0xff]   ;;  %v5053_v15 = vld [vmem:[%s5323_s25 + $0x68] sm:$0xff]   ;;  %v5054_v16 = vld [vmem:[%s5323_s25 + $0x70] sm:$0xff]  }
  0x15   : > { %v5055_v17 = vld [vmem:[%s5323_s25 + $0x78] sm:$0xff]   ;;  %v5056_v18 = vld [vmem:[%s5323_s25 + $0x80] sm:$0xff]   ;;  %v5088_v19 = vld [vmem:[%s5323_s25 + $0x290] sm:$0xff]  }
  0x16   : > { %v5089_v20 = vld [vmem:[%s5323_s25 + $0x298] sm:$0xff]   ;;  %v5057_v21 = vld [vmem:[%s5323_s25 + $0x88] sm:$0xff]   ;;  %4834 = vmatprep.mubr.msk.bf16.mxu1 %vm1402_vm1, %v5088_v19  ;;  %v5058_v22 = vld [vmem:[%s5323_s25 + $0x90] sm:$0xff]  }
  0x17   : > { %4835 = vmatmul.mubr.msk.bf16.vlgmr.msra.gmra.mrb[0].mxu1 %vm1402_vm1, %v5089_v20  ;;  %v5092_v23 = vld [vmem:[%s5323_s25 + $0x2a0] sm:$0xff]   ;;  %v5093_v24 = vld [vmem:[%s5323_s25 + $0x2a8] sm:$0xff]   ;;  %v5059_v25 = vld [vmem:[%s5323_s25 + $0x98] sm:$0xff]  }
  0x18   : > { %4838 = vmatprep.mubr.msk.bf16.mxu1 %vm1402_vm1, %v5092_v23  ;;  %v5060_v26 = vld [vmem:[%s5323_s25 + $0xa0] sm:$0xff]   ;;  %v5096_v27 = vld [vmem:[%s5323_s25 + $0x2b0] sm:$0xff]   ;;  %v5097_v28 = vld [vmem:[%s5323_s25 + $0x2b8] sm:$0xff]  }
  0x19   : > { %v5061_v29 = vld [vmem:[%s5323_s25 + $0xa8] sm:$0xff]   ;;  %v5062_v30 = vld [vmem:[%s5323_s25 + $0xb0] sm:$0xff]   ;;  %v5063_v31 = vld [vmem:[%s5323_s25 + $0xb8] sm:$0xff]  }
  0x1a   : > { %4675 = vmatmul.mubr.msk.bf16.gmra.mrb[4].mxu0 %vm1402_vm1, %v5043_v5  ;;  %v5100_v32 = vld [vmem:[%s5323_s25 + $0x2c0] sm:$0xff]   ;;  %v5101_v33 = vld [vmem:[%s5323_s25 + $0x2c8] sm:$0xff]   ;;  %v5104_v36 = vld [vmem:[%s5323_s25 + $0x2d0] sm:$0xff]  }
  0x1b   : > { %4678 = vmatprep.mubr.msk.bf16.mxu0 %vm1402_vm1, %v5044_v6  ;;  %v5064_v34 = vld [vmem:[%s5323_s25 + $0xc0] sm:$0xff]   ;;  %v5065_v35 = vld [vmem:[%s5323_s25 + $0xc8] sm:$0xff]   ;;  %v5105_v37 = vld [vmem:[%s5323_s25 + $0x2d8] sm:$0xff]  }
  0x1c   : > { %v5066_v38 = vld [vmem:[%s5323_s25 + $0xd0] sm:$0xff]   ;;  %v5067_v39 = vld [vmem:[%s5323_s25 + $0xd8] sm:$0xff]   ;;  %v5108_v40 = vld [vmem:[%s5323_s25 + $0x2e0] sm:$0xff]  }
  0x1d   : > { %v5109_v41 = vld [vmem:[%s5323_s25 + $0x2e8] sm:$0xff]   ;;  %v5068_v42 = vld [vmem:[%s5323_s25 + $0xe0] sm:$0xff]   ;;  %v5112_v44 = vld [vmem:[%s5323_s25 + $0x2f0] sm:$0xff]  }
  0x1e   : > { %v5069_v43 = vld [vmem:[%s5323_s25 + $0xe8] sm:$0xff]   ;;  %v5113_v45 = vld [vmem:[%s5323_s25 + $0x2f8] sm:$0xff]   ;;  %v5070_v46 = vld [vmem:[%s5323_s25 + $0xf0] sm:$0xff]  }
  0x1f   : > { %4839 = vmatmul.mubr.msk.bf16.gmra.mrb[4].mxu1 %vm1402_vm1, %v5093_v24  ;;  %v5071_v47 = vld [vmem:[%s5323_s25 + $0xf8] sm:$0xff]   ;;  %v5116_v48 = vld [vmem:[%s5323_s25 + $0x300] sm:$0xff]   ;;  %v5117_v49 = vld [vmem:[%s5323_s25 + $0x308] sm:$0xff]  }
  0x20   : > { %4842 = vmatprep.mubr.msk.bf16.mxu1 %vm1402_vm1, %v5096_v27  ;;  %v5072_v50 = vld [vmem:[%s5323_s25 + $0x100] sm:$0xff]   ;;  %v5073_v51 = vld [vmem:[%s5323_s25 + $0x108] sm:$0xff]   ;;  %v5120_v52 = vld [vmem:[%s5323_s25 + $0x310] sm:$0xff]  }
  0x21   : > { %v5121_v53 = vld [vmem:[%s5323_s25 + $0x318] sm:$0xff]   ;;  %v5074_v54 = vld [vmem:[%s5323_s25 + $0x110] sm:$0xff]   ;;  %v5124_v56 = vld [vmem:[%s5323_s25 + $0x320] sm:$0xff]  }
  0x22   : > { %4679 = vmatmul.mubr.msk.bf16.gmra.mrb[8].mxu0 %vm1402_vm1, %v5045_v7  ;;  %v5075_v55 = vld [vmem:[%s5323_s25 + $0x118] sm:$0xff]   ;;  %v5125_v57 = vld [vmem:[%s5323_s25 + $0x328] sm:$0xff]   ;;  %v5076_v58 = vld [vmem:[%s5323_s25 + $0x120] sm:$0xff]  }
  0x23   : > { %4682 = vmatprep.mubr.msk.bf16.mxu0 %vm1402_vm1, %v5046_v8  ;;  %v5128_v59 = vld [vmem:[%s5323_s25 + $0x330] sm:$0xff]   ;;  %v5129_v60 = vld [vmem:[%s5323_s25 + $0x338] sm:$0xff]   ;;  %v5077_v61 = vld [vmem:[%s5323_s25 + $0x128] sm:$0xff]  }
  0x24   : > { %v5078_v62 = vld [vmem:[%s5323_s25 + $0x130] sm:$0xff]   ;;  %v5132_v63 = vld [vmem:[%s5323_s25 + $0x340] sm:$0xff]   ;;  %v5133_v0 = vld [vmem:[%s5323_s25 + $0x348] sm:$0xff]  }
  0x25   : > { %v5079_v1 = vld [vmem:[%s5323_s25 + $0x138] sm:$0xff]   ;;  %v5080_v2 = vld [vmem:[%s5323_s25 + $0x140] sm:$0xff]   ;;  %v5136_v3 = vld [vmem:[%s5323_s25 + $0x350] sm:$0xff]  }
  0x26   : > { %v5137_v4 = vld [vmem:[%s5323_s25 + $0x358] sm:$0xff]   ;;  %v5081_v5 = vld [vmem:[%s5323_s25 + $0x148] sm:$0xff]   ;;  %v5082_v6 = vld [vmem:[%s5323_s25 + $0x150] sm:$0xff]  }
  0x27   : > { %4843 = vmatmul.mubr.msk.bf16.gmra.mrb[8].mxu1 %vm1402_vm1, %v5097_v28  ;;  %v5140_v7 = vld [vmem:[%s5323_s25 + $0x360] sm:$0xff]   ;;  %v5141_v8 = vld [vmem:[%s5323_s25 + $0x368] sm:$0xff]   ;;  %v5152_v19 = vld [vmem:[%s5323_s25 + $0x390] sm:$0xff]  }
  0x28   : > { %4846 = vmatprep.mubr.msk.bf16.mxu1 %vm1402_vm1, %v5100_v32  ;;  %v5153_v20 = vld [vmem:[%s5323_s25 + $0x398] sm:$0xff]   ;;  %v5156_v23 = vld [vmem:[%s5323_s25 + $0x3a0] sm:$0xff]   ;;  %v5157_v24 = vld [vmem:[%s5323_s25 + $0x3a8] sm:$0xff]  }
  0x29   : > { %v5158_v27 = vld [vmem:[%s5323_s25 + $0x3b0] sm:$0xff]   ;;  %v5159_v28 = vld [vmem:[%s5323_s25 + $0x3b8] sm:$0xff]  }
  0x2a   : > { %4683 = vmatmul.mubr.msk.bf16.gmra.mrb[12].mxu0 %vm1402_vm1, %v5047_v9  ;;  %v5083_v9 = vld [vmem:[%s5323_s25 + $0x158] sm:$0xff]  }
  0x2b   : > { %4686 = vmatprep.mubr.msk.bf16.mxu0 %vm1402_vm1, %v5048_v10  ;;  %v5084_v10 = vld [vmem:[%s5323_s25 + $0x160] sm:$0xff]  }
  0x2f   : > { %4847 = vmatmul.mubr.msk.bf16.gmra.mrb[12].mxu1 %vm1402_vm1, %v5101_v33  ;;  %v5161_v33 = vld [vmem:[%s5323_s25 + $0x3c8] sm:$0xff]  }
  0x30   : > { %4850 = vmatprep.mubr.msk.bf16.mxu1 %vm1402_vm1, %v5104_v36 }
  0x32   : > { %4687 = vmatmul.mubr.msk.bf16.gmra.mrb[16].mxu0 %vm1402_vm1, %v5049_v11  ;;  %v5144_v11 = vld [vmem:[%s5323_s25 + $0x370] sm:$0xff]  }
  0x33   : > { %4690 = vmatprep.mubr.msk.bf16.mxu0 %vm1402_vm1, %v5050_v12  ;;  %v5145_v12 = vld [vmem:[%s5323_s25 + $0x378] sm:$0xff]  }
  0x37   : > { %4851 = vmatmul.mubr.msk.bf16.gmra.mrb[16].mxu1 %vm1402_vm1, %v5105_v37  ;;  %v5106_v37 = vld [vmem:[%s5323_s25 + $0x1c0] sm:$0xff]  }
  0x38   : > { %4854 = vmatprep.mubr.msk.bf16.mxu1 %vm1402_vm1, %v5108_v40 }
  0x3a   : > { %4691 = vmatmul.mubr.msk.bf16.gmra.mrb[20].mxu0 %vm1402_vm1, %v5051_v13  ;;  %v5085_v13 = vld [vmem:[%s5323_s25 + $0x168] sm:$0xff]  }
  0x3b   : > { %4694 = vmatprep.mubr.msk.bf16.mxu0 %vm1402_vm1, %v5052_v14  ;;  %v5086_v14 = vld [vmem:[%s5323_s25 + $0x170] sm:$0xff]  }
  0x3f   : > { %4855 = vmatmul.mubr.msk.bf16.gmra.mrb[20].mxu1 %vm1402_vm1, %v5109_v41 }
  0x40   : > { %4858 = vmatprep.mubr.msk.bf16.mxu1 %vm1402_vm1, %v5112_v44 }
  0x42   : > { %4695 = vmatmul.mubr.msk.bf16.gmra.mrb[24].mxu0 %vm1402_vm1, %v5053_v15  ;;  %v5148_v15 = vld [vmem:[%s5323_s25 + $0x380] sm:$0xff]  }
  0x43   : > { %4698 = vmatprep.mubr.msk.bf16.mxu0 %vm1402_vm1, %v5054_v16  ;;  %v5149_v16 = vld [vmem:[%s5323_s25 + $0x388] sm:$0xff]  }
  0x47   : > { %4859 = vmatmul.mubr.msk.bf16.gmra.mrb[24].mxu1 %vm1402_vm1, %v5113_v45 }
  0x48   : > { %4862 = vmatprep.mubr.msk.bf16.mxu1 %vm1402_vm1, %v5116_v48 }
  0x4a   : > { %4699 = vmatmul.mubr.msk.bf16.gmra.mrb[28].mxu0 %vm1402_vm1, %v5055_v17  ;;  %v5087_v17 = vld [vmem:[%s5323_s25 + $0x178] sm:$0xff]  }
  0x4b   : > { %4702 = vmatprep.mubr.msk.bf16.mxu0 %vm1402_vm1, %v5056_v18  ;;  %v5090_v18 = vld [vmem:[%s5323_s25 + $0x180] sm:$0xff]  }
  0x4f   : > { %4863 = vmatmul.mubr.msk.bf16.gmra.mrb[28].mxu1 %vm1402_vm1, %v5117_v49  ;;  %v5107_v49 = vld [vmem:[%s5323_s25 + $0x1c8] sm:$0xff]  }
  0x50   : > { %4866 = vmatprep.mubr.msk.bf16.mxu1 %vm1402_vm1, %v5120_v52 }
  0x52   : > { %4703 = vmatmul.mubr.msk.bf16.gmra.mrb[32].mxu0 %vm1402_vm1, %v5057_v21  ;;  %v5091_v21 = vld [vmem:[%s5323_s25 + $0x188] sm:$0xff]  }
  0x53   : > { %4706 = vmatprep.mubr.msk.bf16.mxu0 %vm1402_vm1, %v5058_v22  ;;  %v5094_v22 = vld [vmem:[%s5323_s25 + $0x190] sm:$0xff]  }
  0x57   : > { %4867 = vmatmul.mubr.msk.bf16.gmra.mrb[32].mxu1 %vm1402_vm1, %v5121_v53  ;;  %v5110_v53 = vld [vmem:[%s5323_s25 + $0x1d0] sm:$0xff]  }
  0x58   : > { %4870 = vmatprep.mubr.msk.bf16.mxu1 %vm1402_vm1, %v5124_v56 }
  0x5a   : > { %4707 = vmatmul.mubr.msk.bf16.gmra.mrb[36].mxu0 %vm1402_vm1, %v5059_v25  ;;  %v5095_v25 = vld [vmem:[%s5323_s25 + $0x198] sm:$0xff]  }
  0x5b   : > { %4710 = vmatprep.mubr.msk.bf16.mxu0 %vm1402_vm1, %v5060_v26  ;;  %v5098_v26 = vld [vmem:[%s5323_s25 + $0x1a0] sm:$0xff]  }
  0x5f   : > { %4871 = vmatmul.mubr.msk.bf16.gmra.mrb[36].mxu1 %vm1402_vm1, %v5125_v57 }
  0x60   : > { %4874 = vmatprep.mubr.msk.bf16.mxu1 %vm1402_vm1, %v5128_v59  ;;  %v5164_v59 = vld [vmem:[%s5323_s25 + $0x3e0] sm:$0xff]  }
  0x62   : > { %4711 = vmatmul.mubr.msk.bf16.gmra.mrb[40].mxu0 %vm1402_vm1, %v5061_v29  ;;  %v5099_v29 = vld [vmem:[%s5323_s25 + $0x1a8] sm:$0xff]  }
  0x63   : > { %4714 = vmatprep.mubr.msk.bf16.mxu0 %vm1402_vm1, %v5062_v30  ;;  %v5102_v30 = vld [vmem:[%s5323_s25 + $0x1b0] sm:$0xff]  }
  0x67   : > { %4875 = vmatmul.mubr.msk.bf16.gmra.mrb[40].mxu1 %vm1402_vm1, %v5129_v60 }
  0x68   : > { %4878 = vmatprep.mubr.msk.bf16.mxu1 %vm1402_vm1, %v5132_v63  ;;  %v5165_v63 = vld [vmem:[%s5323_s25 + $0x3e8] sm:$0xff]  }
  0x6a   : > { %4715 = vmatmul.mubr.msk.bf16.gmra.mrb[44].mxu0 %vm1402_vm1, %v5063_v31  ;;  %v5160_v31 = vld [vmem:[%s5323_s25 + $0x3c0] sm:$0xff]  }
  0x6b   : > { %4718 = vmatprep.mubr.msk.bf16.mxu0 %vm1402_vm1, %v5064_v34 }
  0x6f   : > { %4879 = vmatmul.mubr.msk.bf16.gmra.mrb[44].mxu1 %vm1402_vm1, %v5133_v0 }
  0x70   : > { %4882 = vmatprep.mubr.msk.bf16.mxu1 %vm1402_vm1, %v5136_v3 }
  0x72   : > { %4719 = vmatmul.mubr.msk.bf16.gmra.mrb[48].mxu0 %vm1402_vm1, %v5065_v35  ;;  %v5103_v35 = vld [vmem:[%s5323_s25 + $0x1b8] sm:$0xff]  }
  0x73   : > { %4722 = vmatprep.mubr.msk.bf16.mxu0 %vm1402_vm1, %v5066_v38 }
  0x77   : > { %4883 = vmatmul.mubr.msk.bf16.gmra.mrb[48].mxu1 %vm1402_vm1, %v5137_v4 }
  0x78   : > { %4886 = vmatprep.mubr.msk.bf16.mxu1 %vm1402_vm1, %v5140_v7 }
  0x7a   : > { %4723 = vmatmul.mubr.msk.bf16.gmra.mrb[52].mxu0 %vm1402_vm1, %v5067_v39 }
  0x7b   : > { %4726 = vmatprep.mubr.msk.bf16.mxu0 %vm1402_vm1, %v5068_v42 }
  0x7f   : > { %4887 = vmatmul.mubr.msk.bf16.gmra.mrb[52].mxu1 %vm1402_vm1, %v5141_v8 }
  0x80   : > { %4890 = vmatprep.mubr.msk.bf16.mxu1 %vm1402_vm1, %v5144_v11  ;;  %v5166_v11 = vld [vmem:[%s5323_s25 + $0x3f0] sm:$0xff]  }
  0x82   : > { %4727 = vmatmul.mubr.msk.bf16.gmra.mrb[56].mxu0 %vm1402_vm1, %v5069_v43  ;;  %v5162_v43 = vld [vmem:[%s5323_s25 + $0x3d0] sm:$0xff]  }
  0x83   : > { %4730 = vmatprep.mubr.msk.bf16.mxu0 %vm1402_vm1, %v5070_v46 }
  0x87   : > { %4891 = vmatmul.mubr.msk.bf16.gmra.mrb[56].mxu1 %vm1402_vm1, %v5145_v12 }
  0x88   : > { %4894 = vmatprep.mubr.msk.bf16.mxu1 %vm1402_vm1, %v5148_v15  ;;  %v5167_v15 = vld [vmem:[%s5323_s25 + $0x3f8] sm:$0xff]  }
  0x8a   : > { %4731 = vmatmul.mubr.msk.bf16.gmra.mrb[60].mxu0 %vm1402_vm1, %v5071_v47  ;;  %v5163_v47 = vld [vmem:[%s5323_s25 + $0x3d8] sm:$0xff]  }
  0x8b   : > { %4734 = vmatprep.mubr.msk.bf16.mxu0 %vm1402_vm1, %v5072_v50 }
  0x8f   : > { %4895 = vmatmul.mubr.msk.bf16.gmra.mrb[60].mxu1 %vm1402_vm1, %v5149_v16 }
  0x90   : > { %4898 = vmatprep.mubr.msk.bf16.mxu1 %vm1402_vm1, %v5152_v19 }
  0x92   : > { %4735 = vmatmul.mubr.msk.bf16.gmra.mrb[64].mxu0 %vm1402_vm1, %v5073_v51 }
  0x93   : > { %4738 = vmatprep.mubr.msk.bf16.mxu0 %vm1402_vm1, %v5074_v54 }
  0x97   : > { %4899 = vmatmul.mubr.msk.bf16.gmra.mrb[64].mxu1 %vm1402_vm1, %v5153_v20 }
  0x98   : > { %4902 = vmatprep.mubr.msk.bf16.mxu1 %vm1402_vm1, %v5156_v23 }
  0x9a   : > { %4739 = vmatmul.mubr.msk.bf16.gmra.mrb[68].mxu0 %vm1402_vm1, %v5075_v55 }
  0x9b   : > { %4742 = vmatprep.mubr.msk.bf16.mxu0 %vm1402_vm1, %v5076_v58 }
  0x9f   : > { %4903 = vmatmul.mubr.msk.bf16.gmra.mrb[68].mxu1 %vm1402_vm1, %v5157_v24 }
  0xa0   : > { %4906 = vmatprep.mubr.msk.bf16.mxu1 %vm1402_vm1, %v5158_v27 }
  0xa2   : > { %4743 = vmatmul.mubr.msk.bf16.gmra.mrb[72].mxu0 %vm1402_vm1, %v5077_v61 }
  0xa3   : > { %4746 = vmatprep.mubr.msk.bf16.mxu0 %vm1402_vm1, %v5078_v62 }
  0xa7   : > { %4907 = vmatmul.mubr.msk.bf16.gmra.mrb[72].mxu1 %vm1402_vm1, %v5159_v28 }
  0xa8   : > { %4910 = vmatprep.mubr.msk.bf16.mxu1 %vm1402_vm1, %v5160_v31  ;;  %v5119_v31 = vld [vmem:[%s5323_s25 + $0x1f8] sm:$0xff]  }
  0xaa   : > { %4747 = vmatmul.mubr.msk.bf16.gmra.mrb[76].mxu0 %vm1402_vm1, %v5079_v1  ;;  %v5111_v1 = vld [vmem:[%s5323_s25 + $0x1d8] sm:$0xff]  }
  0xab   : > { %4750 = vmatprep.mubr.msk.bf16.mxu0 %vm1402_vm1, %v5080_v2 }
  0xaf   : > { %4911 = vmatmul.mubr.msk.bf16.gmra.mrb[76].mxu1 %vm1402_vm1, %v5161_v33 }
  0xb0   : > { %4914 = vmatprep.mubr.msk.bf16.mxu1 %vm1402_vm1, %v5162_v43 }
  0xb2   : > { %4751 = vmatmul.mubr.msk.bf16.gmra.mrb[80].mxu0 %vm1402_vm1, %v5081_v5  ;;  %v5114_v5 = vld [vmem:[%s5323_s25 + $0x1e0] sm:$0xff]  }
  0xb3   : > { %4754 = vmatprep.mubr.msk.bf16.mxu0 %vm1402_vm1, %v5082_v6 }
  0xb7   : > { %4915 = vmatmul.mubr.msk.bf16.gmra.mrb[80].mxu1 %vm1402_vm1, %v5163_v47 }
  0xb8   : > { %4918 = vmatprep.mubr.msk.bf16.mxu1 %vm1402_vm1, %v5164_v59  ;;  %v5127_v59 = vld [vmem:[%s5323_s25 + $0x218] sm:$0xff]  }
  0xba   : > { %4755 = vmatmul.mubr.msk.bf16.gmra.mrb[84].mxu0 %vm1402_vm1, %v5083_v9 }
  0xbb   : > { %4758 = vmatprep.mubr.msk.bf16.mxu0 %vm1402_vm1, %v5084_v10 }
  0xbf   : > { %4919 = vmatmul.mubr.msk.bf16.gmra.mrb[84].mxu1 %vm1402_vm1, %v5165_v63  ;;  %v5130_v63 = vld [vmem:[%s5323_s25 + $0x220] sm:$0xff]  }
  0xc0   : > { %4922 = vmatprep.mubr.msk.bf16.mxu1 %vm1402_vm1, %v5166_v11 }
  0xc2   : > { %4759 = vmatmul.mubr.msk.bf16.gmra.mrb[88].mxu0 %vm1402_vm1, %v5085_v13 }
  0xc3   : > { %4762 = vmatprep.mubr.msk.bf16.mxu0 %vm1402_vm1, %v5086_v14 }
  0xc7   : > { %4923 = vmatmul.mubr.msk.bf16.gmra.mrb[88].mxu1 %vm1402_vm1, %v5167_v15 }
  0xca   : > { %4763 = vmatmul.mubr.msk.bf16.gmra.mrb[92].mxu0 %vm1402_vm1, %v5087_v17  ;;  %v5115_v17 = vld [vmem:[%s5323_s25 + $0x1e8] sm:$0xff]  }
  0xcb   : > { %4766 = vmatprep.mubr.msk.bf16.mxu0 %vm1402_vm1, %v5090_v18 }
  0xd2   : > { %4767 = vmatmul.mubr.msk.bf16.gmra.mrb[96].mxu0 %vm1402_vm1, %v5091_v21  ;;  %v5118_v21 = vld [vmem:[%s5323_s25 + $0x1f0] sm:$0xff]  }
  0xd3   : > { %4770 = vmatprep.mubr.msk.bf16.mxu0 %vm1402_vm1, %v5094_v22 }
  0xda   : > { %4771 = vmatmul.mubr.msk.bf16.gmra.mrb[100].mxu0 %vm1402_vm1, %v5095_v25 }
  0xdb   : > { %4774 = vmatprep.mubr.msk.bf16.mxu0 %vm1402_vm1, %v5098_v26 }
  0xe2   : > { %4775 = vmatmul.mubr.msk.bf16.gmra.mrb[104].mxu0 %vm1402_vm1, %v5099_v29 }
  0xe3   : > { %4778 = vmatprep.mubr.msk.bf16.mxu0 %vm1402_vm1, %v5102_v30 }
  0xe5   : > { %v4672_v32 = vpop.f32.mrb[0].mxu0 }
  0xe6   : > { %v1825_v34 = vpop.f32.mrb[1].mxu0  ;;  %v2850_v41 = vmax.f32 %v4672_v32, 0.0 }
  0xe7   : > { %v4673_v36 = vpop.f32.mrb[2].mxu0  ;;  %v2848_v39 = vmax.f32 %v1825_v34, 0.0 }
  0xe8   : > { %v1828_v38 = vpop.f32.mrb[3].mxu0  ;;  %v2851_v44 = vmax.f32 %v4673_v36, 0.0 }
  0xe9   : > { %v2849_v40 = vmax.f32 %v1828_v38, 0.0 }
  0xea   : > { %4779 = vmatmul.mubr.msk.bf16.gmra.mrb[108].mxu0 %vm1402_vm1, %v5103_v35  ;;  %v5122_v35 = vld [vmem:[%s5323_s25 + $0x200] sm:$0xff]  }
  0xeb   : > { %v3104_v42 = vadd.f32 %v2849_v40, %v2848_v39  ;;  %4782 = vmatprep.mubr.msk.bf16.mxu0 %vm1402_vm1, %v5106_v37 }
  0xed   : > { %v3105_v45 = vadd.f32 %v3104_v42, %v2850_v41  ;;  %v4676_v46 = vpop.f32.mrb[4].mxu0 }
  0xee   : > { %v1841_v48 = vpop.f32.mrb[5].mxu0  ;;  %v2854_v57 = vmax.f32 %v4676_v46, 0.0 }
  0xef   : > { %v2852_v50 = vmax.f32 %v1841_v48, 0.0  ;;  %v3106_v51 = vadd.f32 %v3105_v45, %v2851_v44  ;;  %v4677_v52 = vpop.f32.mrb[6].mxu0  ;;  %v5123_v45 = vld [vmem:[%s5323_s25 + $0x208] sm:$0xff]  }
  0xf0   : > { %v1844_v54 = vpop.f32.mrb[7].mxu0  ;;  %v2855_v60 = vmax.f32 %v4677_v52, 0.0 }
  0xf1   : > { %v3107_v55 = vadd.f32 %v3106_v51, %v2852_v50  ;;  %v2853_v56 = vmax.f32 %v1844_v54, 0.0 }
  0xf2   : > { %4783 = vmatmul.mubr.msk.bf16.gmra.mrb[112].mxu0 %vm1402_vm1, %v5107_v49  ;;  %v5126_v49 = vld [vmem:[%s5323_s25 + $0x210] sm:$0xff]  }
  0xf3   : > { %v3108_v58 = vadd.f32 %v3107_v55, %v2853_v56  ;;  %4786 = vmatprep.mubr.msk.bf16.mxu0 %vm1402_vm1, %v5110_v53 }
  0xf5   : > { %v3109_v61 = vadd.f32 %v3108_v58, %v2854_v57  ;;  %v4680_v62 = vpop.f32.mrb[8].mxu0 }
  0xf6   : > { %v1857_v0 = vpop.f32.mrb[9].mxu0  ;;  %v2858_v9 = vmax.f32 %v4680_v62, 0.0 }
  0xf7   : > { %v2856_v2 = vmax.f32 %v1857_v0, 0.0  ;;  %v3110_v3 = vadd.f32 %v3109_v61, %v2855_v60  ;;  %v4681_v4 = vpop.f32.mrb[10].mxu0 }
  0xf8   : > { %v1860_v6 = vpop.f32.mrb[11].mxu0  ;;  %v2859_v12 = vmax.f32 %v4681_v4, 0.0 }
  0xf9   : > { %v3111_v7 = vadd.f32 %v3110_v3, %v2856_v2  ;;  %v2857_v8 = vmax.f32 %v1860_v6, 0.0 }
  0xfa   : > { %4787 = vmatmul.mubr.msk.bf16.gmra.mrb[116].mxu0 %vm1402_vm1, %v5111_v1 }
  0xfb   : > { %v3112_v10 = vadd.f32 %v3111_v7, %v2857_v8  ;;  %4790 = vmatprep.mubr.msk.bf16.mxu0 %vm1402_vm1, %v5114_v5 }
  0xfd   : > { %v3113_v13 = vadd.f32 %v3112_v10, %v2858_v9  ;;  %v4684_v14 = vpop.f32.mrb[12].mxu0  ;;  %v5131_v9 = vld [vmem:[%s5323_s25 + $0x228] sm:$0xff]  }
  0xfe   : > { %v1873_v16 = vpop.f32.mrb[13].mxu0  ;;  %v2862_v25 = vmax.f32 %v4684_v14, 0.0 }
  0xff   : > { %v2860_v18 = vmax.f32 %v1873_v16, 0.0  ;;  %v3114_v19 = vadd.f32 %v3113_v13, %v2859_v12  ;;  %v4685_v20 = vpop.f32.mrb[14].mxu0  ;;  %v5134_v13 = vld [vmem:[%s5323_s25 + $0x230] sm:$0xff]  }
 0x100   : > { %v1876_v22 = vpop.f32.mrb[15].mxu0  ;;  %v2863_v27 = vmax.f32 %v4685_v20, 0.0 }
 0x101   : > { %v3115_v23 = vadd.f32 %v3114_v19, %v2860_v18  ;;  %v2861_v24 = vmax.f32 %v1876_v22, 0.0 }
 0x102   : > { %4791 = vmatmul.mubr.msk.bf16.gmra.mrb[120].mxu0 %vm1402_vm1, %v5115_v17 }
 0x103   : > { %v3116_v26 = vadd.f32 %v3115_v23, %v2861_v24  ;;  %4794 = vmatprep.mubr.msk.bf16.mxu0 %vm1402_vm1, %v5118_v21  ;;  %v5135_v23 = vld [vmem:[%s5323_s25 + $0x238] sm:$0xff]  }
 0x105   : > { %v3117_v28 = vadd.f32 %v3116_v26, %v2862_v25  ;;  %v4688_v29 = vpop.f32.mrb[16].mxu0  ;;  %v5138_v26 = vld [vmem:[%s5323_s25 + $0x240] sm:$0xff]  }
 0x106   : > { %v1889_v30 = vpop.f32.mrb[17].mxu0  ;;  %v2866_v39 = vmax.f32 %v4688_v29, 0.0 }
 0x107   : > { %v2864_v32 = vmax.f32 %v1889_v30, 0.0  ;;  %v3118_v33 = vadd.f32 %v3117_v28, %v2863_v27  ;;  %v4689_v34 = vpop.f32.mrb[18].mxu0 }
 0x108   : > { %v1892_v36 = vpop.f32.mrb[19].mxu0  ;;  %v2867_v41 = vmax.f32 %v4689_v34, 0.0 }
 0x109   : > { %v3119_v37 = vadd.f32 %v3118_v33, %v2864_v32  ;;  %v2865_v38 = vmax.f32 %v1892_v36, 0.0  ;;  %v5565_v32 = vpop.f32.mrb[0].mxu1 }
 0x10a   : > { %4795 = vmatmul.mubr.msk.bf16.gmra.mrb[124].mxu0 %vm1402_vm1, %v5119_v31  ;;  %v5567_v36 = vpop.f32.mrb[1].mxu1 }
 0x10b   : > { %v3120_v40 = vadd.f32 %v3119_v37, %v2865_v38  ;;  %4798 = vmatprep.mubr.msk.bf16.mxu0 %vm1402_vm1, %v5122_v35  ;;  %v5139_v38 = vld [vmem:[%s5323_s25 + $0x248] sm:$0xff]  }
 0x10d   : > { %v3121_v42 = vadd.f32 %v3120_v40, %v2866_v39  ;;  %v4692_v43 = vpop.f32.mrb[20].mxu0  ;;  %v5570_v39 = vpop.f32.mrb[2].mxu1 }
 0x10e   : > { %v1905_v44 = vpop.f32.mrb[21].mxu0  ;;  %v2870_v53 = vmax.f32 %v4692_v43, 0.0  ;;  %v5142_v43 = vld [vmem:[%s5323_s25 + $0x250] sm:$0xff]  }
 0x10f   : > { %v2868_v46 = vmax.f32 %v1905_v44, 0.0  ;;  %v3122_v47 = vadd.f32 %v3121_v42, %v2867_v41  ;;  %v4693_v48 = vpop.f32.mrb[22].mxu0  ;;  %v5573_v44 = vpop.f32.mrb[3].mxu1 }
 0x110   : > { %v1908_v50 = vpop.f32.mrb[23].mxu0  ;;  %v2871_v55 = vmax.f32 %v4693_v48, 0.0 }
 0x111   : > { %v3123_v51 = vadd.f32 %v3122_v47, %v2868_v46  ;;  %v2869_v52 = vmax.f32 %v1908_v50, 0.0  ;;  %v5577_v50 = vpop.f32.mrb[4].mxu1 }
 0x112   : > { %4799 = vmatmul.mubr.msk.bf16.gmra.mrb[128].mxu0 %vm1402_vm1, %v5123_v45 }
 0x113   : > { %v3124_v54 = vadd.f32 %v3123_v51, %v2869_v52  ;;  %4802 = vmatprep.mubr.msk.bf16.mxu0 %vm1402_vm1, %v5126_v49 }
 0x115   : > { %v3125_v56 = vadd.f32 %v3124_v54, %v2870_v53  ;;  %v4696_v57 = vpop.f32.mrb[24].mxu0  ;;  %v5579_v54 = vpop.f32.mrb[5].mxu1 }
 0x116   : > { %v1921_v58 = vpop.f32.mrb[25].mxu0  ;;  %v2874_v3 = vmax.f32 %v4696_v57, 0.0  ;;  %v5582_v57 = vpop.f32.mrb[6].mxu1 }
 0x117   : > { %v2872_v60 = vmax.f32 %v1921_v58, 0.0  ;;  %v3126_v61 = vadd.f32 %v3125_v56, %v2871_v55  ;;  %v4697_v62 = vpop.f32.mrb[26].mxu0  ;;  %v5143_v56 = vld [vmem:[%s5323_s25 + $0x258] sm:$0xff]  }
 0x118   : > { %v1924_v0 = vpop.f32.mrb[27].mxu0  ;;  %v2875_v5 = vmax.f32 %v4697_v62, 0.0  ;;  %v5585_v62 = vpop.f32.mrb[7].mxu1 }
 0x119   : > { %v3127_v1 = vadd.f32 %v3126_v61, %v2872_v60  ;;  %v2873_v2 = vmax.f32 %v1924_v0, 0.0  ;;  %v5146_v61 = vld [vmem:[%s5323_s25 + $0x260] sm:$0xff]  }
 0x11a   : > { %4803 = vmatmul.mubr.msk.bf16.gmra.mrb[132].mxu0 %vm1402_vm1, %v5127_v59 }
 0x11b   : > { %v3128_v4 = vadd.f32 %v3127_v1, %v2873_v2  ;;  %4806 = vmatprep.mubr.msk.bf16.mxu0 %vm1402_vm1, %v5130_v63 }
 0x11d   : > { %v3129_v6 = vadd.f32 %v3128_v4, %v2874_v3  ;;  %v4700_v7 = vpop.f32.mrb[28].mxu0  ;;  %v5589_v4 = vpop.f32.mrb[8].mxu1 }
 0x11e   : > { %v1937_v8 = vpop.f32.mrb[29].mxu0  ;;  %v2878_v17 = vmax.f32 %v4700_v7, 0.0 }
 0x11f   : > { %v2876_v10 = vmax.f32 %v1937_v8, 0.0  ;;  %v3130_v11 = vadd.f32 %v3129_v6, %v2875_v5  ;;  %v4701_v12 = vpop.f32.mrb[30].mxu0  ;;  %v5591_v8 = vpop.f32.mrb[9].mxu1 }
 0x120   : > { %v1940_v14 = vpop.f32.mrb[31].mxu0  ;;  %v2879_v19 = vmax.f32 %v4701_v12, 0.0 }
 0x121   : > { %v3131_v15 = vadd.f32 %v3130_v11, %v2876_v10  ;;  %v2877_v16 = vmax.f32 %v1940_v14, 0.0  ;;  %v5147_v10 = vld [vmem:[%s5323_s25 + $0x268] sm:$0xff]   ;;  %v5594_v11 = vpop.f32.mrb[10].mxu1 }
 0x122   : > { %4807 = vmatmul.mubr.msk.bf16.gmra.mrb[136].mxu0 %vm1402_vm1, %v5131_v9 }
 0x123   : > { %v3132_v18 = vadd.f32 %v3131_v15, %v2877_v16  ;;  %4810 = vmatprep.mubr.msk.bf16.mxu0 %vm1402_vm1, %v5134_v13  ;;  %v5150_v15 = vld [vmem:[%s5323_s25 + $0x270] sm:$0xff]   ;;  %v5597_v16 = vpop.f32.mrb[11].mxu1 }
 0x125   : > { %v3133_v20 = vadd.f32 %v3132_v18, %v2878_v17  ;;  %v4704_v21 = vpop.f32.mrb[32].mxu0 }
 0x126   : > { %v1953_v22 = vpop.f32.mrb[33].mxu0  ;;  %v2882_v30 = vmax.f32 %v4704_v21, 0.0 }
 0x127   : > { %v5560_v24 = vadd.f32 %v3133_v20, %v2879_v19  ;;  %v4705_v25 = vpop.f32.mrb[34].mxu0  ;;  %v2880_v28 = vmax.f32 %v1953_v22, 0.0  ;;  %v5601_v22 = vpop.f32.mrb[12].mxu1 }
 0x128   : > { %v1956_v27 = vpop.f32.mrb[35].mxu0  ;;  %v2883_v33 = vmax.f32 %v4705_v25, 0.0 }
 0x129   : > { %v2881_v29 = vmax.f32 %v1956_v27, 0.0  ;;  %v5168_v27 = vld [vmem:[%s5896_s2] sm:$0xff]  }
 0x12a   : > { %4811 = vmatmul.mubr.msk.bf16.gmra.mrb[140].mxu0 %vm1402_vm1, %v5135_v23 }
 0x12b   : > { %v3141_v31 = vadd.f32 %v2881_v29, %v2880_v28  ;;  %4814 = vmatprep.mubr.msk.bf16.mxu0 %vm1402_vm1, %v5138_v26  ;;  %v5606_v28 = vpop.f32.mrb[13].mxu1 }
 0x12d   : > { %v3142_v34 = vadd.f32 %v3141_v31, %v2882_v30  ;;  %v4708_v35 = vpop.f32.mrb[36].mxu0  ;;  %v5151_v30 = vld [vmem:[%s5323_s25 + $0x278] sm:$0xff]   ;;  %v5224_v31 = vmov 0.0  }
 0x12e   : > { %v1969_v37 = vpop.f32.mrb[37].mxu0  ;;  %v2886_v48 = vmax.f32 %v4708_v35, 0.0  ;;  %4926 = vmatprep.subr.bf16.mxu1 %v5224_v31  ;;  %4942 = vmatprep.mubr.msk.bf16.mxu1 %vm5225_vm4, %v5224_v31 }
 0x12f   : > { %v2884_v40 = vmax.f32 %v1969_v37, 0.0  ;;  %v3143_v41 = vadd.f32 %v3142_v34, %v2883_v33  ;;  %v4709_v42 = vpop.f32.mrb[38].mxu0  ;;  %v5610_v33 = vpop.f32.mrb[14].mxu1  ;;  %4927 = vmatpush3.bf16.msra.mxu1 %v5168_v27 }
 0x130   : > { %v1972_v45 = vpop.f32.mrb[39].mxu0  ;;  %v2887_v51 = vmax.f32 %v4709_v42, 0.0  ;;  %4928 = vmatprep.subr.bf16.mxu1 %v5224_v31 }
 0x131   : > { %v3144_v46 = vadd.f32 %v3143_v41, %v2884_v40  ;;  %v2885_v47 = vmax.f32 %v1972_v45, 0.0  ;;  %v5613_v40 = vpop.f32.mrb[15].mxu1 }
 0x132   : > { %4815 = vmatmul.mubr.msk.bf16.gmra.mrb[144].mxu0 %vm1402_vm1, %v5139_v38  ;;  %v5154_v38 = vld [vmem:[%s5323_s25 + $0x280] sm:$0xff]  }
 0x133   : > { %v3145_v49 = vadd.f32 %v3144_v46, %v2885_v47  ;;  %4818 = vmatprep.mubr.msk.bf16.mxu0 %vm1402_vm1, %v5142_v43  ;;  %v5618_v47 = vpop.f32.mrb[16].mxu1 }
 0x135   : > { %v3146_v52 = vadd.f32 %v3145_v49, %v2886_v48  ;;  %v4712_v53 = vpop.f32.mrb[40].mxu0 }
 0x136   : > { %v1985_v55 = vpop.f32.mrb[41].mxu0  ;;  %v2890_v2 = vmax.f32 %v4712_v53, 0.0 }
 0x137   : > { %v2888_v58 = vmax.f32 %v1985_v55, 0.0  ;;  %v3147_v59 = vadd.f32 %v3146_v52, %v2887_v51  ;;  %v4713_v60 = vpop.f32.mrb[42].mxu0  ;;  %v5620_v52 = vpop.f32.mrb[17].mxu1  ;;  %v5155_v55 = vld [vmem:[%s5323_s25 + $0x288] sm:$0xff]  }
 0x138   : > { %v1988_v63 = vpop.f32.mrb[43].mxu0  ;;  %v2891_v5 = vmax.f32 %v4713_v60, 0.0 }
 0x139   : > { %v3148_v0 = vadd.f32 %v3147_v59, %v2888_v58  ;;  %v2889_v1 = vmax.f32 %v1988_v63, 0.0 }
 0x13a   : > { %4819 = vmatmul.mubr.msk.bf16.gmra.mrb[148].mxu0 %vm1402_vm1, %v5143_v56  ;;  %v5623_v56 = vpop.f32.mrb[18].mxu1 }
 0x13b   : > { %v3149_v3 = vadd.f32 %v3148_v0, %v2889_v1  ;;  %4822 = vmatprep.mubr.msk.bf16.mxu0 %vm1402_vm1, %v5146_v61  ;;  %v5625_v61 = vpop.f32.mrb[19].mxu1 }
 0x13d   : > { %v3150_v6 = vadd.f32 %v3149_v3, %v2890_v2  ;;  %v4716_v7 = vpop.f32.mrb[44].mxu0  ;;  %v5628_v2 = vpop.f32.mrb[20].mxu1 }
 0x13e   : > { %v2001_v9 = vpop.f32.mrb[45].mxu0  ;;  %v2894_v20 = vmax.f32 %v4716_v7, 0.0 }
 0x13f   : > { %v2892_v12 = vmax.f32 %v2001_v9, 0.0  ;;  %v3151_v13 = vadd.f32 %v3150_v6, %v2891_v5  ;;  %v4717_v14 = vpop.f32.mrb[46].mxu0  ;;  %v5630_v6 = vpop.f32.mrb[21].mxu1 }
 0x140   : > { %v2004_v17 = vpop.f32.mrb[47].mxu0  ;;  %v2895_v23 = vmax.f32 %v4717_v14, 0.0  ;;  %v5632_v7 = vpop.f32.mrb[22].mxu1 }
 0x141   : > { %v3152_v18 = vadd.f32 %v3151_v13, %v2892_v12  ;;  %v2893_v19 = vmax.f32 %v2004_v17, 0.0  ;;  %v5634_v13 = vpop.f32.mrb[23].mxu1 }
 0x142   : > { %4823 = vmatmul.mubr.msk.bf16.gmra.mrb[152].mxu0 %vm1402_vm1, %v5147_v10 }
 0x143   : > { %v3153_v21 = vadd.f32 %v3152_v18, %v2893_v19  ;;  %4826 = vmatprep.mubr.msk.bf16.mxu0 %vm1402_vm1, %v5150_v15  ;;  %v5636_v15 = vpop.f32.mrb[24].mxu1 }
 0x145   : > { %v3154_v25 = vadd.f32 %v3153_v21, %v2894_v20  ;;  %v4720_v26 = vpop.f32.mrb[48].mxu0  ;;  %v5638_v20 = vpop.f32.mrb[25].mxu1 }
 0x146   : > { %v2017_v29 = vpop.f32.mrb[49].mxu0  ;;  %v2898_v45 = vmax.f32 %v4720_v26, 0.0 }
 0x147   : > { %v2896_v34 = vmax.f32 %v2017_v29, 0.0  ;;  %v3155_v35 = vadd.f32 %v3154_v25, %v2895_v23  ;;  %v4721_v37 = vpop.f32.mrb[50].mxu0  ;;  %v5640_v23 = vpop.f32.mrb[26].mxu1 }
 0x148   : > { %v2020_v41 = vpop.f32.mrb[51].mxu0  ;;  %v2899_v48 = vmax.f32 %v4721_v37, 0.0  ;;  %v5642_v27 = vpop.f32.mrb[27].mxu1 }
 0x149   : > { %v3156_v42 = vadd.f32 %v3155_v35, %v2896_v34  ;;  %v2897_v43 = vmax.f32 %v2020_v41, 0.0  ;;  %v4864_v29 = vpop.f32.mrb[28].mxu1 }
 0x14a   : > { %4827 = vmatmul.mubr.msk.bf16.gmra.mrb[156].mxu0 %vm1402_vm1, %v5151_v30  ;;  %v2593_v35 = vpop.f32.mrb[29].mxu1 }
 0x14b   : > { %v3157_v46 = vadd.f32 %v3156_v42, %v2897_v43  ;;  %4830 = vmatprep.mubr.msk.bf16.mxu0 %vm1402_vm1, %v5154_v38  ;;  %v4865_v37 = vpop.f32.mrb[30].mxu1  ;;  %v3135_v38 = vrot.slane %v5560_v24, 4 }
 0x14d   : > { %v3158_v49 = vadd.f32 %v3157_v46, %v2898_v45  ;;  %v4724_v51 = vpop.f32.mrb[52].mxu0  ;;  %v5169_v45 = vld [vmem:[%s5896_s2 + $0x8] sm:$0xff]   ;;  %v2596_v46 = vpop.f32.mrb[31].mxu1 }
 0x14e   : > { %v2033_v53 = vpop.f32.mrb[53].mxu0  ;;  %v2902_v3 = vmax.f32 %v4724_v51, 0.0  ;;  %v3040_v51 = vmax.f32 %v2593_v35, 0.0  ;;  %4929 = vmatpush3.bf16.msra.mxu1 %v5169_v45 }
 0x14f   : > { %v2900_v58 = vmax.f32 %v2033_v53, 0.0  ;;  %v3159_v59 = vadd.f32 %v3158_v49, %v2899_v48  ;;  %v4725_v60 = vpop.f32.mrb[54].mxu0  ;;  %v3042_v49 = vmax.f32 %v4864_v29, 0.0  ;;  %v3041_v53 = vmax.f32 %v2596_v46, 0.0  ;;  %4930 = vmatprep.subr.bf16.mxu1 %v5224_v31 }
 0x150   : > { %v2036_v63 = vpop.f32.mrb[55].mxu0  ;;  %v2903_v9 = vmax.f32 %v4725_v60, 0.0 }
 0x151   : > { %v3160_v0 = vadd.f32 %v3159_v59, %v2900_v58  ;;  %v2901_v1 = vmax.f32 %v2036_v63, 0.0  ;;  %v3043_v63 = vmax.f32 %v4865_v37, 0.0 }
 0x152   : > { %4831 = vmatmul.mubr.msk.bf16.gmra.mrb[160].mxu0 %vm1402_vm1, %v5155_v55 }
 0x153   : > { %v3161_v5 = vadd.f32 %v3160_v0, %v2901_v1  ;;  %v3326_v0 = vadd.f32 %v3041_v53, %v3040_v51  ;;  %v3136_v1 = vadd.f32 %v3135_v38, %v5560_v24 }
 0x155   : > { %v3162_v10 = vadd.f32 %v3161_v5, %v2902_v3  ;;  %v4728_v12 = vpop.f32.mrb[56].mxu0 }
 0x156   : > { %v2049_v14 = vpop.f32.mrb[57].mxu0  ;;  %v2906_v30 = vmax.f32 %v4728_v12, 0.0 }
 0x157   : > { %v2904_v17 = vmax.f32 %v2049_v14, 0.0  ;;  %v3163_v18 = vadd.f32 %v3162_v10, %v2903_v9  ;;  %v4729_v19 = vpop.f32.mrb[58].mxu0  ;;  %v3327_v9 = vadd.f32 %v3326_v0, %v3042_v49  ;;  %v4868_v10 = vpop.f32.mrb[32].mxu1 }
 0x158   : > { %v2052_v21 = vpop.f32.mrb[59].mxu0  ;;  %v2907_v41 = vmax.f32 %v4729_v19, 0.0  ;;  %v3046_v45 = vmax.f32 %v4868_v10, 0.0 }
 0x159   : > { %v3164_v25 = vadd.f32 %v3163_v18, %v2904_v17  ;;  %v2905_v26 = vmax.f32 %v2052_v21, 0.0  ;;  %v2609_v17 = vpop.f32.mrb[33].mxu1  ;;  %v3328_v19 = vadd.f32 %v3327_v9, %v3043_v63 }
 0x15a   : > { %v3044_v18 = vmax.f32 %v2609_v17, 0.0  ;;  %v4869_v21 = vpop.f32.mrb[34].mxu1 }
 0x15b   : > { %v3165_v34 = vadd.f32 %v3164_v25, %v2905_v26  ;;  %v3137_v25 = vrot.slane %v3136_v1, 2  ;;  %v3047_v53 = vmax.f32 %v4869_v21, 0.0 }
 0x15c   : > { %v3329_v37 = vadd.f32 %v3328_v19, %v3044_v18 }
 0x15d   : > { %v3166_v42 = vadd.f32 %v3165_v34, %v2906_v30  ;;  %v4732_v43 = vpop.f32.mrb[60].mxu0  ;;  %v2612_v34 = vpop.f32.mrb[35].mxu1 }
 0x15e   : > { %v2065_v48 = vpop.f32.mrb[61].mxu0  ;;  %v2910_v12 = vmax.f32 %v4732_v43, 0.0 }
 0x15f   : > { %v2908_v55 = vmax.f32 %v2065_v48, 0.0  ;;  %v3167_v58 = vadd.f32 %v3166_v42, %v2907_v41  ;;  %v4733_v59 = vpop.f32.mrb[62].mxu0  ;;  %v3045_v41 = vmax.f32 %v2612_v34, 0.0  ;;  %v3138_v48 = vadd.f32 %v3137_v25, %v3136_v1 }
 0x160   : > { %v2068_v60 = vpop.f32.mrb[63].mxu0  ;;  %v2911_v26 = vmax.f32 %v4733_v59, 0.0 }
 0x161   : > { %v3168_v3 = vadd.f32 %v3167_v58, %v2908_v55  ;;  %v2909_v5 = vmax.f32 %v2068_v60, 0.0  ;;  %v3330_v46 = vadd.f32 %v3329_v37, %v3045_v41  ;;  %v4872_v58 = vpop.f32.mrb[36].mxu1 }
 0x162   : > { %v2625_v0 = vpop.f32.mrb[37].mxu1 }
 0x163   : > { %v3169_v14 = vadd.f32 %v3168_v3, %v2909_v5  ;;  %v3331_v55 = vadd.f32 %v3330_v46, %v3046_v45  ;;  %v3048_v3 = vmax.f32 %v2625_v0, 0.0  ;;  %v4873_v9 = vpop.f32.mrb[38].mxu1 }
 0x164   : > { %v2628_v19 = vpop.f32.mrb[39].mxu1 }
 0x165   : > { %v3170_v29 = vadd.f32 %v3169_v14, %v2910_v12  ;;  %v4736_v30 = vpop.f32.mrb[64].mxu0  ;;  %v3332_v5 = vadd.f32 %v3331_v55, %v3047_v53  ;;  %v3139_v12 = vrot.slane %v3138_v48, 1 }
 0x166   : > { %v2081_v35 = vpop.f32.mrb[65].mxu0  ;;  %v2914_v59 = vmax.f32 %v4736_v30, 0.0  ;;  %v3050_v30 = vmax.f32 %v4872_v58, 0.0 }
 0x167   : > { %v3171_v42 = vadd.f32 %v3170_v29, %v2911_v26  ;;  %v4737_v24 = vpop.f32.mrb[66].mxu0  ;;  %v2912_v49 = vmax.f32 %v2081_v35, 0.0  ;;  %v3333_v25 = vadd.f32 %v3332_v5, %v3048_v3  ;;  %v3049_v26 = vmax.f32 %v2628_v19, 0.0 }
 0x168   : > { %v2084_v38 = vpop.f32.mrb[67].mxu0  ;;  %v2915_v17 = vmax.f32 %v4737_v24, 0.0  ;;  %v4876_v24 = vpop.f32.mrb[40].mxu1 }
 0x169   : > { %v3172_v43 = vrot.slane %v3171_v42, 4  ;;  %v2913_v51 = vmax.f32 %v2084_v38, 0.0  ;;  %v3334_v41 = vadd.f32 %v3333_v25, %v3049_v26  ;;  %v3054_v26 = vmax.f32 %v4876_v24, 0.0 }
 0x16b   : > { %v3173_v60 = vadd.f32 %v3172_v43, %v3171_v42  ;;  %v3178_v63 = vadd.f32 %v2913_v51, %v2912_v49  ;;  %v3140_v42 = vadd.f32 %v3139_v12, %v3138_v48  ;;  %v3051_v43 = vmax.f32 %v4873_v9, 0.0 }
 0x16c   : > { %v3335_v49 = vadd.f32 %v3334_v41, %v3050_v30 }
 0x16d   : > { %v3174_v14 = vrot.slane %v3173_v60, 2  ;;  %v3179_v18 = vadd.f32 %v3178_v63, %v2914_v59  ;;  %v4740_v10 = vpop.f32.mrb[68].mxu0  ;;  %v2641_v59 = vpop.f32.mrb[41].mxu1  ;;  %v3400_v3 = vmul.f32 0.00390625, %v3140_v42 }
 0x16e   : > { %v2097_v1 = vpop.f32.mrb[69].mxu0  ;;  %v2918_v53 = vmax.f32 %v4740_v10, 0.0  ;;  %v3052_v63 = vmax.f32 %v2641_v59, 0.0  ;;  %v4877_v0 = vpop.f32.mrb[42].mxu1 }
 0x16f   : > { %v3175_v29 = vadd.f32 %v3174_v14, %v3173_v60  ;;  %v2916_v21 = vmax.f32 %v2097_v1, 0.0  ;;  %v3180_v34 = vadd.f32 %v3179_v18, %v2915_v17  ;;  %v4741_v35 = vpop.f32.mrb[70].mxu0  ;;  %v3336_v60 = vadd.f32 %v3335_v49, %v3051_v43  ;;  %v2644_v48 = vpop.f32.mrb[43].mxu1 }
 0x170   : > { %v2100_v37 = vpop.f32.mrb[71].mxu0  ;;  %v2919_v14 = vmax.f32 %v4741_v35, 0.0  ;;  %v3053_v19 = vmax.f32 %v2644_v48, 0.0  ;;  %v4880_v42 = vpop.f32.mrb[44].mxu1 }
 0x171   : > { %v3176_v38 = vrot.slane %v3175_v29, 1  ;;  %v3181_v45 = vadd.f32 %v3180_v34, %v2916_v21  ;;  %v2917_v46 = vmax.f32 %v2100_v37, 0.0  ;;  %v3337_v18 = vadd.f32 %v3336_v60, %v3052_v63 }
 0x172   : > { %v3055_v34 = vmax.f32 %v4877_v0, 0.0  ;;  %v3058_v60 = vmax.f32 %v4880_v42, 0.0 }
 0x173   : > { %v3177_v51 = vadd.f32 %v3176_v38, %v3175_v29  ;;  %v3182_v55 = vadd.f32 %v3181_v45, %v2917_v46  ;;  %v5170_v29 = vld [vmem:[%s5896_s2 + $0x10] sm:$0xff]   ;;  %v3338_v37 = vadd.f32 %v3337_v18, %v3053_v19  ;;  %v2657_v46 = vpop.f32.mrb[45].mxu1 }
 0x174   : > { %4931 = vmatpush3.bf16.msra.mxu1 %v5170_v29  ;;  %v3056_v43 = vmax.f32 %v2657_v46, 0.0  ;;  %v4881_v24 = vpop.f32.mrb[46].mxu1 }
 0x175   : > { %v3401_v5 = vmul.f32 0.00390625, %v3177_v51  ;;  %v3183_v58 = vadd.f32 %v3182_v55, %v2918_v53  ;;  %v4744_v17 = vpop.f32.mrb[72].mxu0  ;;  %v3339_v41 = vadd.f32 %v3338_v37, %v3054_v26  ;;  %4932 = vmatprep.subr.bf16.mxu1 %v5224_v31  ;;  %v2660_v59 = vpop.f32.mrb[47].mxu1 }
 0x176   : > { %v2113_v12 = vpop.f32.mrb[73].mxu0  ;;  %v2922_v38 = vmax.f32 %v4744_v17, 0.0 }
 0x177   : > { %v5650_v9 = vsel %vm3416_vm2, %v3401_v5, %v3400_v3  ;;  %v2920_v1 = vmax.f32 %v2113_v12, 0.0  ;;  %v3184_v25 = vadd.f32 %v3183_v58, %v2919_v14  ;;  %v4745_v10 = vpop.f32.mrb[74].mxu0  ;;  %v3340_v49 = vadd.f32 %v3339_v41, %v3055_v34 }
 0x178   : > { %v2116_v21 = vpop.f32.mrb[75].mxu0  ;;  %v2923_v51 = vmax.f32 %v4745_v10, 0.0  ;;  %v3057_v3 = vmax.f32 %v2660_v59, 0.0  ;;  %v3059_v12 = vmax.f32 %v4881_v24, 0.0 }
 0x179   : > { %v3185_v35 = vadd.f32 %v3184_v25, %v2920_v1  ;;  %v2921_v30 = vmax.f32 %v2116_v21, 0.0  ;;  %v3341_v0 = vadd.f32 %v3340_v49, %v3056_v43  ;;  %v4884_v25 = vpop.f32.mrb[48].mxu1 }
 0x17a   : > { %v2673_v10 = vpop.f32.mrb[49].mxu1 }
 0x17b   : > { %v3186_v45 = vadd.f32 %v3185_v35, %v2921_v30  ;;  %v3342_v18 = vadd.f32 %v3341_v0, %v3057_v3  ;;  %v3060_v21 = vmax.f32 %v2673_v10, 0.0  ;;  %v4885_v37 = vpop.f32.mrb[50].mxu1 }
 0x17c   : > { %v2676_v42 = vpop.f32.mrb[51].mxu1  ;;  %v3063_v59 = vmax.f32 %v4885_v37, 0.0 }
 0x17d   : > { %v3187_v53 = vadd.f32 %v3186_v45, %v2922_v38  ;;  %v4748_v55 = vpop.f32.mrb[76].mxu0  ;;  %v3343_v1 = vadd.f32 %v3342_v18, %v3058_v60  ;;  %v3062_v45 = vmax.f32 %v4884_v25, 0.0  ;;  %v3061_v43 = vmax.f32 %v2676_v42, 0.0  ;;  %v4888_v3 = vpop.f32.mrb[52].mxu1  ;;  %v5171_v25 = vld [vmem:[%s5896_s2 + $0x18] sm:$0xff]  }
 0x17e   : > { %v2129_v63 = vpop.f32.mrb[77].mxu0  ;;  %v2926_v26 = vmax.f32 %v4748_v55, 0.0  ;;  %v3066_v10 = vmax.f32 %v4888_v3, 0.0  ;;  %4933 = vmatpush3.bf16.msra.mxu1 %v5171_v25 }
 0x17f   : > { %v2924_v5 = vmax.f32 %v2129_v63, 0.0  ;;  %v3188_v14 = vadd.f32 %v3187_v53, %v2923_v51  ;;  %v4749_v58 = vpop.f32.mrb[78].mxu0  ;;  %v3344_v34 = vadd.f32 %v3343_v1, %v3059_v12  ;;  %4934 = vmatprep.subr.bf16.mxu1 %v5224_v31 }
 0x180   : > { %v2132_v48 = vpop.f32.mrb[79].mxu0  ;;  %v2927_v35 = vmax.f32 %v4749_v58, 0.0  ;;  %v2689_v58 = vpop.f32.mrb[53].mxu1 }
 0x181   : > { %v3189_v17 = vadd.f32 %v3188_v14, %v2924_v5  ;;  %v2925_v19 = vmax.f32 %v2132_v48, 0.0  ;;  %v3345_v46 = vadd.f32 %v3344_v34, %v3060_v21  ;;  %v3064_v48 = vmax.f32 %v2689_v58, 0.0  ;;  %v4889_v18 = vpop.f32.mrb[54].mxu1 }
 0x182   : > { %v3067_v42 = vmax.f32 %v4889_v18, 0.0 }
 0x183   : > { %v3190_v29 = vadd.f32 %v3189_v17, %v2925_v19  ;;  %v3346_v63 = vadd.f32 %v3345_v46, %v3061_v43 }
 0x185   : > { %v3191_v30 = vadd.f32 %v3190_v29, %v2926_v26  ;;  %v4752_v41 = vpop.f32.mrb[80].mxu0  ;;  %v3347_v0 = vadd.f32 %v3346_v63, %v3062_v45  ;;  %v2692_v26 = vpop.f32.mrb[55].mxu1 }
 0x186   : > { %v2145_v38 = vpop.f32.mrb[81].mxu0  ;;  %v2930_v5 = vmax.f32 %v4752_v41, 0.0  ;;  %v3065_v34 = vmax.f32 %v2692_v26, 0.0 }
 0x187   : > { %v2928_v49 = vmax.f32 %v2145_v38, 0.0  ;;  %v3192_v24 = vadd.f32 %v3191_v30, %v2927_v35  ;;  %v4753_v51 = vpop.f32.mrb[82].mxu0  ;;  %v3348_v12 = vadd.f32 %v3347_v0, %v3063_v59 }
 0x188   : > { %v2148_v53 = vpop.f32.mrb[83].mxu0  ;;  %v2931_v17 = vmax.f32 %v4753_v51, 0.0 }
 0x189   : > { %v3193_v55 = vadd.f32 %v3192_v24, %v2928_v49  ;;  %v2929_v60 = vmax.f32 %v2148_v53, 0.0  ;;  %v3349_v21 = vadd.f32 %v3348_v12, %v3064_v48  ;;  %v4892_v49 = vpop.f32.mrb[56].mxu1 }
 0x18a   : > { %v2705_v53 = vpop.f32.mrb[57].mxu1  ;;  %v3070_v58 = vmax.f32 %v4892_v49, 0.0 }
 0x18b   : > { %v3194_v14 = vadd.f32 %v3193_v55, %v2929_v60  ;;  %v3350_v38 = vadd.f32 %v3349_v21, %v3065_v34  ;;  %v3068_v59 = vmax.f32 %v2705_v53, 0.0  ;;  %v4893_v55 = vpop.f32.mrb[58].mxu1 }
 0x18c   : > { %v3071_v26 = vmax.f32 %v4893_v55, 0.0 }
 0x18d   : > { %v3195_v19 = vadd.f32 %v3194_v14, %v2930_v5  ;;  %v4756_v1 = vpop.f32.mrb[84].mxu0  ;;  %v3351_v43 = vadd.f32 %v3350_v38, %v3066_v10  ;;  %v2708_v5 = vpop.f32.mrb[59].mxu1 }
 0x18e   : > { %v2161_v29 = vpop.f32.mrb[85].mxu0  ;;  %v2934_v24 = vmax.f32 %v4756_v1, 0.0  ;;  %v3069_v12 = vmax.f32 %v2708_v5, 0.0  ;;  %v4896_v34 = vpop.f32.mrb[60].mxu1 }
 0x18f   : > { %v2932_v37 = vmax.f32 %v2161_v29, 0.0  ;;  %v3196_v35 = vadd.f32 %v3195_v19, %v2931_v17  ;;  %v4757_v30 = vpop.f32.mrb[86].mxu0  ;;  %v3352_v63 = vadd.f32 %v3351_v43, %v3067_v42 }
 0x190   : > { %v2164_v41 = vpop.f32.mrb[87].mxu0  ;;  %v2935_v60 = vmax.f32 %v4757_v30, 0.0  ;;  %v2721_v30 = vpop.f32.mrb[61].mxu1 }
 0x191   : > { %v3197_v45 = vadd.f32 %v3196_v35, %v2932_v37  ;;  %v2933_v46 = vmax.f32 %v2164_v41, 0.0  ;;  %v3353_v48 = vadd.f32 %v3352_v63, %v3068_v59  ;;  %v4897_v42 = vpop.f32.mrb[62].mxu1  ;;  %v3072_v43 = vmax.f32 %v2721_v30, 0.0 }
 0x192   : > { %v2724_v49 = vpop.f32.mrb[63].mxu1 }
 0x193   : > { %v3198_v51 = vadd.f32 %v3197_v45, %v2933_v46  ;;  %v3354_v29 = vadd.f32 %v3353_v48, %v3069_v12  ;;  %v3073_v53 = vmax.f32 %v2724_v49, 0.0  ;;  %v4900_v48 = vpop.f32.mrb[64].mxu1 }
 0x195   : > { %v3199_v0 = vadd.f32 %v3198_v51, %v2934_v24  ;;  %v4760_v3 = vpop.f32.mrb[88].mxu0  ;;  %v3355_v21 = vadd.f32 %v3354_v29, %v3070_v58  ;;  %v3074_v51 = vmax.f32 %v4896_v34, 0.0  ;;  %v3363_v5 = vadd.f32 %v3073_v53, %v3072_v43 }
 0x196   : > { %v2177_v14 = vpop.f32.mrb[89].mxu0  ;;  %v2938_v37 = vmax.f32 %v4760_v3, 0.0 }
 0x197   : > { %v2936_v18 = vmax.f32 %v2177_v14, 0.0  ;;  %v3200_v17 = vadd.f32 %v3199_v0, %v2935_v60  ;;  %v4761_v19 = vpop.f32.mrb[90].mxu0  ;;  %v5660_v41 = vadd.f32 %v3355_v21, %v3071_v26  ;;  %v3075_v0 = vmax.f32 %v4897_v42, 0.0 }
 0x198   : > { %v2180_v25 = vpop.f32.mrb[91].mxu0  ;;  %v2939_v38 = vmax.f32 %v4761_v19, 0.0  ;;  %v3364_v58 = vadd.f32 %v3363_v5, %v3074_v51 }
 0x199   : > { %v3201_v1 = vadd.f32 %v3200_v17, %v2936_v18  ;;  %v2937_v10 = vmax.f32 %v2180_v25, 0.0  ;;  %v2737_v17 = vpop.f32.mrb[65].mxu1 }
 0x19a   : > { %v3076_v19 = vmax.f32 %v2737_v17, 0.0  ;;  %v3365_v25 = vadd.f32 %v3364_v58, %v3075_v0  ;;  %v4901_v26 = vpop.f32.mrb[66].mxu1 }
 0x19b   : > { %v3202_v35 = vadd.f32 %v3201_v1, %v2937_v10  ;;  %v2740_v21 = vpop.f32.mrb[67].mxu1  ;;  %v3079_v51 = vmax.f32 %v4901_v26, 0.0 }
 0x19d   : > { %v3203_v45 = vadd.f32 %v3202_v35, %v2938_v37  ;;  %v4764_v46 = vpop.f32.mrb[92].mxu0  ;;  %v3366_v37 = vadd.f32 %v3365_v25, %v3076_v19  ;;  %v3077_v35 = vmax.f32 %v2740_v21, 0.0 }
 0x19e   : > { %v2193_v24 = vpop.f32.mrb[93].mxu0  ;;  %v2942_v12 = vmax.f32 %v4764_v46, 0.0 }
 0x19f   : > { %v2940_v59 = vmax.f32 %v2193_v24, 0.0  ;;  %v3204_v63 = vadd.f32 %v3203_v45, %v2939_v38  ;;  %v4765_v55 = vpop.f32.mrb[94].mxu0  ;;  %v3078_v45 = vmax.f32 %v4900_v48, 0.0  ;;  %v3367_v43 = vadd.f32 %v3366_v37, %v3077_v35 }
 0x1a0   : > { %v2196_v60 = vpop.f32.mrb[95].mxu0  ;;  %v2943_v29 = vmax.f32 %v4765_v55, 0.0 }
 0x1a1   : > { %v3205_v3 = vadd.f32 %v3204_v63, %v2940_v59  ;;  %v2941_v14 = vmax.f32 %v2196_v60, 0.0  ;;  %v3368_v53 = vadd.f32 %v3367_v43, %v3078_v45  ;;  %v4904_v59 = vpop.f32.mrb[68].mxu1 }
 0x1a2   : > { %v2753_v0 = vpop.f32.mrb[69].mxu1  ;;  %v3082_v35 = vmax.f32 %v4904_v59, 0.0 }
 0x1a3   : > { %v3206_v18 = vadd.f32 %v3205_v3, %v2941_v14  ;;  %v3080_v5 = vmax.f32 %v2753_v0, 0.0  ;;  %v3369_v3 = vadd.f32 %v3368_v53, %v3079_v51  ;;  %v4905_v14 = vpop.f32.mrb[70].mxu1 }
 0x1a4   : > { %v2756_v19 = vpop.f32.mrb[71].mxu1  ;;  %v3083_v43 = vmax.f32 %v4905_v14, 0.0 }
 0x1a5   : > { %v3207_v1 = vadd.f32 %v3206_v18, %v2942_v12  ;;  %v4768_v10 = vpop.f32.mrb[96].mxu0  ;;  %v3370_v25 = vadd.f32 %v3369_v3, %v3080_v5 }
 0x1a6   : > { %v2209_v34 = vpop.f32.mrb[97].mxu0  ;;  %v2946_v60 = vmax.f32 %v4768_v10, 0.0 }
 0x1a7   : > { %v3208_v30 = vadd.f32 %v3207_v1, %v2943_v29  ;;  %v4769_v42 = vpop.f32.mrb[98].mxu0  ;;  %v2944_v24 = vmax.f32 %v2209_v34, 0.0  ;;  %v3081_v29 = vmax.f32 %v2756_v19, 0.0 }
 0x1a8   : > { %v2212_v38 = vpop.f32.mrb[99].mxu0  ;;  %v2947_v12 = vmax.f32 %v4769_v42, 0.0 }
 0x1a9   : > { %v3209_v49 = vrot.slane %v3208_v30, 4  ;;  %v2945_v46 = vmax.f32 %v2212_v38, 0.0  ;;  %v3371_v10 = vadd.f32 %v3370_v25, %v3081_v29  ;;  %v5172_v29 = vld [vmem:[%s5896_s2 + $0x20] sm:$0xff]  }
 0x1aa   : > { %4935 = vmatpush3.bf16.msra.mxu1 %v5172_v29 }
 0x1ab   : > { %v3210_v63 = vadd.f32 %v3209_v49, %v3208_v30  ;;  %v3215_v55 = vadd.f32 %v2945_v46, %v2944_v24  ;;  %v3372_v49 = vadd.f32 %v3371_v10, %v3082_v35  ;;  %v4908_v24 = vpop.f32.mrb[72].mxu1  ;;  %4936 = vmatprep.subr.bf16.mxu1 %v5224_v31 }
 0x1ac   : > { %v2769_v53 = vpop.f32.mrb[73].mxu1 }
 0x1ad   : > { %v3211_v58 = vrot.slane %v3210_v63, 2  ;;  %v3216_v18 = vadd.f32 %v3215_v55, %v2946_v60  ;;  %v4772_v17 = vpop.f32.mrb[100].mxu0  ;;  %v3084_v60 = vmax.f32 %v2769_v53, 0.0  ;;  %v3373_v55 = vadd.f32 %v3372_v49, %v3083_v43 }
 0x1ae   : > { %v2225_v48 = vpop.f32.mrb[101].mxu0  ;;  %v2950_v46 = vmax.f32 %v4772_v17, 0.0 }
 0x1af   : > { %v3212_v1 = vadd.f32 %v3211_v58, %v3210_v63  ;;  %v2948_v21 = vmax.f32 %v2225_v48, 0.0  ;;  %v3217_v26 = vadd.f32 %v3216_v18, %v2947_v12  ;;  %v4773_v34 = vpop.f32.mrb[102].mxu0  ;;  %v4909_v63 = vpop.f32.mrb[74].mxu1  ;;  %v3374_v18 = vadd.f32 %v3373_v55, %v3084_v60 }
 0x1b0   : > { %v2228_v37 = vpop.f32.mrb[103].mxu0  ;;  %v2951_v5 = vmax.f32 %v4773_v34, 0.0  ;;  %v2772_v59 = vpop.f32.mrb[75].mxu1  ;;  %v3087_v35 = vmax.f32 %v4909_v63, 0.0 }
 0x1b1   : > { %v3213_v30 = vrot.slane %v3212_v1, 1  ;;  %v3218_v38 = vadd.f32 %v3217_v26, %v2948_v21  ;;  %v2949_v45 = vmax.f32 %v2228_v37, 0.0  ;;  %v3085_v19 = vmax.f32 %v2772_v59, 0.0 }
 0x1b2   : > { %v3086_v21 = vmax.f32 %v4908_v24, 0.0 }
 0x1b3   : > { %v3214_v42 = vadd.f32 %v3213_v30, %v3212_v1  ;;  %v3219_v51 = vadd.f32 %v3218_v38, %v2949_v45  ;;  %v3375_v26 = vadd.f32 %v3374_v18, %v3085_v19  ;;  %v4912_v30 = vpop.f32.mrb[76].mxu1 }
 0x1b4   : > { %v2785_v45 = vpop.f32.mrb[77].mxu1 }
 0x1b5   : > { %v3402_v0 = vmul.f32 0.00390625, %v3214_v42  ;;  %v3220_v3 = vadd.f32 %v3219_v51, %v2950_v46  ;;  %v4776_v58 = vpop.f32.mrb[104].mxu0  ;;  %v3376_v10 = vadd.f32 %v3375_v26, %v3086_v21  ;;  %v3088_v43 = vmax.f32 %v2785_v45, 0.0  ;;  %v4913_v42 = vpop.f32.mrb[78].mxu1 }
 0x1b6   : > { %v2241_v12 = vpop.f32.mrb[105].mxu0  ;;  %v2788_v60 = vpop.f32.mrb[79].mxu1 }
 0x1b7   : > { %v5663_v14 = vsel %vm3418_vm3, %v3402_v0, %v5650_v9  ;;  %v2952_v48 = vmax.f32 %v2241_v12, 0.0  ;;  %v3221_v25 = vadd.f32 %v3220_v3, %v2951_v5  ;;  %v4777_v17 = vpop.f32.mrb[106].mxu0  ;;  %v2954_v9 = vmax.f32 %v4776_v58, 0.0  ;;  %v4916_v29 = vpop.f32.mrb[80].mxu1 }
 0x1b8   : > { %v2244_v1 = vpop.f32.mrb[107].mxu0  ;;  %v3377_v49 = vadd.f32 %v3376_v10, %v3087_v35  ;;  %v2955_v46 = vmax.f32 %v4777_v17, 0.0  ;;  %v3089_v0 = vmax.f32 %v2788_v60, 0.0  ;;  %v3090_v12 = vmax.f32 %v4912_v30, 0.0  ;;  %v2801_v17 = vpop.f32.mrb[81].mxu1 }
 0x1b9   : > { %v3222_v34 = vadd.f32 %v3221_v25, %v2952_v48  ;;  %v2953_v37 = vmax.f32 %v2244_v1, 0.0  ;;  %v3091_v48 = vmax.f32 %v4913_v42, 0.0  ;;  %v3092_v26 = vmax.f32 %v2801_v17, 0.0 }
 0x1ba   : > { %v3378_v55 = vadd.f32 %v3377_v49, %v3088_v43  ;;  %v3094_v42 = vmax.f32 %v4916_v29, 0.0 }
 0x1bb   : > { %v3223_v38 = vadd.f32 %v3222_v34, %v2953_v37  ;;  %v4917_v37 = vpop.f32.mrb[82].mxu1 }
 0x1bc   : > { %v3379_v18 = vadd.f32 %v3378_v55, %v3089_v0  ;;  %v3095_v0 = vmax.f32 %v4917_v37, 0.0 }
 0x1bd   : > { %v3224_v51 = vadd.f32 %v3223_v38, %v2954_v9  ;;  %v4780_v53 = vpop.f32.mrb[108].mxu0  ;;  %v2804_v38 = vpop.f32.mrb[83].mxu1 }
 0x1be   : > { %v2257_v24 = vpop.f32.mrb[109].mxu0  ;;  %v3380_v25 = vadd.f32 %v3379_v18, %v3090_v12  ;;  %v2958_v1 = vmax.f32 %v4780_v53, 0.0  ;;  %v3093_v49 = vmax.f32 %v2804_v38, 0.0 }
 0x1bf   : > { %v2956_v5 = vmax.f32 %v2257_v24, 0.0  ;;  %v3225_v3 = vadd.f32 %v3224_v51, %v2955_v46  ;;  %v4781_v63 = vpop.f32.mrb[110].mxu0 }
 0x1c0   : > { %v2260_v59 = vpop.f32.mrb[111].mxu0  ;;  %v3381_v34 = vadd.f32 %v3380_v25, %v3091_v48  ;;  %v2959_v35 = vmax.f32 %v4781_v63, 0.0 }
 0x1c1   : > { %v3226_v19 = vadd.f32 %v3225_v3, %v2956_v5  ;;  %v2957_v58 = vmax.f32 %v2260_v59, 0.0  ;;  %v4920_v3 = vpop.f32.mrb[84].mxu1 }
 0x1c2   : > { %v3382_v43 = vadd.f32 %v3381_v34, %v3092_v26  ;;  %v2817_v63 = vpop.f32.mrb[85].mxu1  ;;  %v3098_v37 = vmax.f32 %v4920_v3, 0.0 }
 0x1c3   : > { %v3227_v21 = vadd.f32 %v3226_v19, %v2957_v58  ;;  %v3096_v18 = vmax.f32 %v2817_v63, 0.0  ;;  %v4921_v58 = vpop.f32.mrb[86].mxu1 }
 0x1c4   : > { %v3383_v24 = vadd.f32 %v3382_v43, %v3093_v49  ;;  %v3099_v49 = vmax.f32 %v4921_v58, 0.0 }
 0x1c5   : > { %v3228_v10 = vadd.f32 %v3227_v21, %v2958_v1  ;;  %v4784_v9 = vpop.f32.mrb[112].mxu0  ;;  %v2820_v21 = vpop.f32.mrb[87].mxu1 }
 0x1c6   : > { %v2273_v45 = vpop.f32.mrb[113].mxu0  ;;  %v3384_v5 = vadd.f32 %v3383_v24, %v3094_v42  ;;  %v2962_v59 = vmax.f32 %v4784_v9, 0.0  ;;  %v3097_v34 = vmax.f32 %v2820_v21, 0.0  ;;  %v5174_v21 = vld [vmem:[%s5896_s2 + $0x30] sm:$0xff]  }
 0x1c7   : > { %v2960_v30 = vmax.f32 %v2273_v45, 0.0  ;;  %v3229_v46 = vadd.f32 %v3228_v10, %v2959_v35  ;;  %v4785_v51 = vpop.f32.mrb[114].mxu0 }
 0x1c8   : > { %v2276_v60 = vpop.f32.mrb[115].mxu0  ;;  %v3385_v19 = vadd.f32 %v3384_v5, %v3095_v0  ;;  %v2963_v48 = vmax.f32 %v4785_v51, 0.0 }
 0x1c9   : > { %v3230_v55 = vadd.f32 %v3229_v46, %v2960_v30  ;;  %v2961_v53 = vmax.f32 %v2276_v60, 0.0  ;;  %v4924_v46 = vpop.f32.mrb[88].mxu1 }
 0x1ca   : > { %v3386_v26 = vadd.f32 %v3385_v19, %v3096_v18  ;;  %v2833_v51 = vpop.f32.mrb[89].mxu1  ;;  %v3102_v18 = vmax.f32 %v4924_v46, 0.0 }
 0x1cb   : > { %v3231_v12 = vadd.f32 %v3230_v55, %v2961_v53  ;;  %v3100_v24 = vmax.f32 %v2833_v51, 0.0  ;;  %v4925_v53 = vpop.f32.mrb[90].mxu1 }
 0x1cc   : > { %v3387_v45 = vadd.f32 %v3386_v26, %v3097_v34  ;;  %v2836_v3 = vpop.f32.mrb[91].mxu1  ;;  %v3103_v26 = vmax.f32 %v4925_v53, 0.0 }
 0x1cd   : > { %v3232_v25 = vadd.f32 %v3231_v12, %v2962_v59  ;;  %v4788_v1 = vpop.f32.mrb[116].mxu0  ;;  %v5173_v12 = vld [vmem:[%s5896_s2 + $0x28] sm:$0xff]   ;;  %v3101_v58 = vmax.f32 %v2836_v3, 0.0 }
 0x1ce   : > { %v2289_v17 = vpop.f32.mrb[117].mxu0  ;;  %v3388_v30 = vadd.f32 %v3387_v45, %v3098_v37  ;;  %v2966_v60 = vmax.f32 %v4788_v1, 0.0  ;;  %4937 = vmatpush3.bf16.msra.mxu1 %v5173_v12  ;;  %v5175_v45 = vld [vmem:[%s5896_s2 + $0x38] sm:$0xff]  }
 0x1cf   : > { %v2964_v29 = vmax.f32 %v2289_v17, 0.0  ;;  %v3233_v35 = vadd.f32 %v3232_v25, %v2963_v48  ;;  %v4789_v10 = vpop.f32.mrb[118].mxu0  ;;  %4938 = vmatprep.subr.bf16.mxu1 %v5224_v31 }
 0x1d0   : > { %v2292_v38 = vpop.f32.mrb[119].mxu0  ;;  %v3389_v55 = vadd.f32 %v3388_v30, %v3099_v49  ;;  %v2967_v0 = vmax.f32 %v4789_v10, 0.0 }
 0x1d1   : > { %v3234_v43 = vadd.f32 %v3233_v35, %v2964_v29  ;;  %v2965_v9 = vmax.f32 %v2292_v38, 0.0 }
 0x1d2   : > { %v3390_v19 = vadd.f32 %v3389_v55, %v3100_v24  ;;  %4939 = vmatpush3.bf16.msra.mxu1 %v5174_v21 }
 0x1d3   : > { %v3235_v42 = vadd.f32 %v3234_v43, %v2965_v9  ;;  %4940 = vmatprep.subr.bf16.mxu1 %v5224_v31 }
 0x1d4   : > { %v3391_v34 = vadd.f32 %v3390_v19, %v3101_v58 }
 0x1d5   : > { %v3236_v5 = vadd.f32 %v3235_v42, %v2966_v60  ;;  %v4792_v59 = vpop.f32.mrb[120].mxu0 }
 0x1d6   : > { %v2305_v63 = vpop.f32.mrb[121].mxu0  ;;  %v3392_v10 = vadd.f32 %v3391_v34, %v3102_v18  ;;  %v2970_v38 = vmax.f32 %v4792_v59, 0.0  ;;  %4941 = vmatpush3.bf16.msra.mxu1 %v5175_v45 }
 0x1d7   : > { %v2968_v48 = vmax.f32 %v2305_v63, 0.0  ;;  %v3237_v25 = vadd.f32 %v3236_v5, %v2967_v0  ;;  %v4793_v1 = vpop.f32.mrb[122].mxu0  ;;  %4946 = vmatprep.subr.bf16.mxu1 %v5224_v31 }
 0x1d8   : > { %v2308_v17 = vpop.f32.mrb[123].mxu0  ;;  %v5681_v43 = vadd.f32 %v3392_v10, %v3103_v26  ;;  %v2971_v9 = vmax.f32 %v4793_v1, 0.0 }
 0x1d9   : > { %v3238_v29 = vadd.f32 %v3237_v25, %v2968_v48  ;;  %v2969_v35 = vmax.f32 %v2308_v17, 0.0 }
 0x1db   : > { %v3239_v37 = vadd.f32 %v3238_v29, %v2969_v35 }
 0x1dd   : > { %v3240_v49 = vadd.f32 %v3239_v37, %v2970_v38  ;;  %v4796_v30 = vpop.f32.mrb[124].mxu0 }
 0x1de   : > { %v2321_v46 = vpop.f32.mrb[125].mxu0  ;;  %v2974_v0 = vmax.f32 %v4796_v30, 0.0 }
 0x1df   : > { %v2972_v60 = vmax.f32 %v2321_v46, 0.0  ;;  %v3241_v42 = vadd.f32 %v3240_v49, %v2971_v9  ;;  %v4797_v51 = vpop.f32.mrb[126].mxu0 }
 0x1e0   : > { %v2324_v24 = vpop.f32.mrb[127].mxu0  ;;  %v2975_v59 = vmax.f32 %v4797_v51, 0.0 }
 0x1e1   : > { %v3242_v55 = vadd.f32 %v3241_v42, %v2972_v60  ;;  %v2973_v53 = vmax.f32 %v2324_v24, 0.0 }
 0x1e3   : > { %v3243_v5 = vadd.f32 %v3242_v55, %v2973_v53 }
 0x1e5   : > { %v3244_v12 = vadd.f32 %v3243_v5, %v2974_v0  ;;  %v4800_v3 = vpop.f32.mrb[128].mxu0 }
 0x1e6   : > { %v2337_v63 = vpop.f32.mrb[129].mxu0  ;;  %v2978_v17 = vmax.f32 %v4800_v3, 0.0 }
 0x1e7   : > { %v3245_v18 = vadd.f32 %v3244_v12, %v2975_v59  ;;  %v4801_v19 = vpop.f32.mrb[130].mxu0  ;;  %v2976_v25 = vmax.f32 %v2337_v63, 0.0 }
 0x1e8   : > { %v2340_v58 = vpop.f32.mrb[131].mxu0  ;;  %v2979_v29 = vmax.f32 %v4801_v19, 0.0 }
 0x1e9   : > { %v3246_v48 = vrot.slane %v3245_v18, 4  ;;  %v2977_v1 = vmax.f32 %v2340_v58, 0.0 }
 0x1eb   : > { %v3247_v21 = vadd.f32 %v3246_v48, %v3245_v18  ;;  %v3252_v26 = vadd.f32 %v2977_v1, %v2976_v25 }
 0x1ed   : > { %v3248_v34 = vrot.slane %v3247_v21, 2  ;;  %v3253_v35 = vadd.f32 %v3252_v26, %v2978_v17  ;;  %v4804_v10 = vpop.f32.mrb[132].mxu0 }
 0x1ee   : > { %v2353_v38 = vpop.f32.mrb[133].mxu0  ;;  %v2982_v24 = vmax.f32 %v4804_v10, 0.0 }
 0x1ef   : > { %v3249_v37 = vadd.f32 %v3248_v34, %v3247_v21  ;;  %v2980_v45 = vmax.f32 %v2353_v38, 0.0  ;;  %v3254_v9 = vadd.f32 %v3253_v35, %v2979_v29  ;;  %v4805_v49 = vpop.f32.mrb[134].mxu0 }
 0x1f0   : > { %v2356_v30 = vpop.f32.mrb[135].mxu0  ;;  %v2983_v0 = vmax.f32 %v4805_v49, 0.0 }
 0x1f1   : > { %v3250_v46 = vrot.slane %v3249_v37, 1  ;;  %v3255_v60 = vadd.f32 %v3254_v9, %v2980_v45  ;;  %v2981_v42 = vmax.f32 %v2356_v30, 0.0 }
 0x1f3   : > { %v3251_v51 = vadd.f32 %v3250_v46, %v3249_v37  ;;  %v3256_v55 = vadd.f32 %v3255_v60, %v2981_v42 }
 0x1f5   : > { %v3403_v53 = vmul.f32 0.00390625, %v3251_v51  ;;  %v3257_v5 = vadd.f32 %v3256_v55, %v2982_v24  ;;  %v4808_v59 = vpop.f32.mrb[136].mxu0 }
 0x1f6   : > { %v2369_v12 = vpop.f32.mrb[137].mxu0  ;;  %v2986_v1 = vmax.f32 %v4808_v59, 0.0 }
 0x1f7   : > { %v5686_v3 = vsel %vm3420_vm5, %v3403_v53, %v5663_v14  ;;  %v2984_v63 = vmax.f32 %v2369_v12, 0.0  ;;  %v3258_v18 = vadd.f32 %v3257_v5, %v2983_v0  ;;  %v4809_v19 = vpop.f32.mrb[138].mxu0 }
 0x1f8   : > { %v2372_v58 = vpop.f32.mrb[139].mxu0  ;;  %v2987_v17 = vmax.f32 %v4809_v19, 0.0 }
 0x1f9   : > { %v3259_v48 = vadd.f32 %v3258_v18, %v2984_v63  ;;  %v2985_v25 = vmax.f32 %v2372_v58, 0.0 }
 0x1fb   : > { %v3260_v21 = vadd.f32 %v3259_v48, %v2985_v25 }
 0x1fd   : > { %v3261_v26 = vadd.f32 %v3260_v21, %v2986_v1  ;;  %v4812_v34 = vpop.f32.mrb[140].mxu0 }
 0x1fe   : > { %v2385_v29 = vpop.f32.mrb[141].mxu0  ;;  %v2990_v14 = vmax.f32 %v4812_v34, 0.0 }
 0x1ff   : > { %v2988_v35 = vmax.f32 %v2385_v29, 0.0  ;;  %v3262_v10 = vadd.f32 %v3261_v26, %v2987_v17  ;;  %v4813_v38 = vpop.f32.mrb[142].mxu0 }
 0x200   : > { %v2388_v37 = vpop.f32.mrb[143].mxu0  ;;  %v2991_v30 = vmax.f32 %v4813_v38, 0.0 }
 0x201   : > { %v3263_v45 = vadd.f32 %v3262_v10, %v2988_v35  ;;  %v2989_v9 = vmax.f32 %v2388_v37, 0.0 }
 0x203   : > { %v3264_v49 = vadd.f32 %v3263_v45, %v2989_v9 }
 0x205   : > { %v3265_v46 = vadd.f32 %v3264_v49, %v2990_v14  ;;  %v4816_v60 = vpop.f32.mrb[144].mxu0 }
 0x206   : > { %v2401_v42 = vpop.f32.mrb[145].mxu0  ;;  %v2994_v59 = vmax.f32 %v4816_v60, 0.0 }
 0x207   : > { %v2992_v51 = vmax.f32 %v2401_v42, 0.0  ;;  %v3266_v24 = vadd.f32 %v3265_v46, %v2991_v30  ;;  %v4817_v55 = vpop.f32.mrb[146].mxu0 }
 0x208   : > { %v2404_v53 = vpop.f32.mrb[147].mxu0  ;;  %v2995_v63 = vmax.f32 %v4817_v55, 0.0 }
 0x209   : > { %v3267_v0 = vadd.f32 %v3266_v24, %v2992_v51  ;;  %v2993_v5 = vmax.f32 %v2404_v53, 0.0 }
 0x20b   : > { %v3268_v12 = vadd.f32 %v3267_v0, %v2993_v5 }
 0x20d   : > { %v3269_v18 = vadd.f32 %v3268_v12, %v2994_v59  ;;  %v4820_v19 = vpop.f32.mrb[148].mxu0 }
 0x20e   : > { %v2417_v58 = vpop.f32.mrb[149].mxu0  ;;  %v2998_v34 = vmax.f32 %v4820_v19, 0.0 }
 0x20f   : > { %v2996_v48 = vmax.f32 %v2417_v58, 0.0  ;;  %v3270_v25 = vadd.f32 %v3269_v18, %v2995_v63  ;;  %v4821_v1 = vpop.f32.mrb[150].mxu0 }
 0x210   : > { %v2420_v21 = vpop.f32.mrb[151].mxu0  ;;  %v2999_v35 = vmax.f32 %v4821_v1, 0.0 }
 0x211   : > { %v3271_v17 = vadd.f32 %v3270_v25, %v2996_v48  ;;  %v2997_v26 = vmax.f32 %v2420_v21, 0.0 }
 0x213   : > { %v3272_v29 = vadd.f32 %v3271_v17, %v2997_v26 }
 0x215   : > { %v3273_v10 = vadd.f32 %v3272_v29, %v2998_v34  ;;  %v4824_v38 = vpop.f32.mrb[152].mxu0 }
 0x216   : > { %v2433_v37 = vpop.f32.mrb[153].mxu0  ;;  %v3002_v60 = vmax.f32 %v4824_v38, 0.0 }
 0x217   : > { %v3000_v45 = vmax.f32 %v2433_v37, 0.0  ;;  %v3274_v9 = vadd.f32 %v3273_v10, %v2999_v35  ;;  %v4825_v14 = vpop.f32.mrb[154].mxu0 }
 0x218   : > { %v2436_v49 = vpop.f32.mrb[155].mxu0  ;;  %v3003_v51 = vmax.f32 %v4825_v14, 0.0 }
 0x219   : > { %v3275_v30 = vadd.f32 %v3274_v9, %v3000_v45  ;;  %v3001_v46 = vmax.f32 %v2436_v49, 0.0 }
 0x21b   : > { %v3276_v42 = vadd.f32 %v3275_v30, %v3001_v46  ;;  %v3012_v30 = vmax.f32 %v5567_v36, 0.0 }
 0x21d   : > { %v3277_v24 = vadd.f32 %v3276_v42, %v3002_v60  ;;  %v4828_v55 = vpop.f32.mrb[156].mxu0  ;;  %v3013_v42 = vmax.f32 %v5573_v44, 0.0 }
 0x21e   : > { %v2449_v53 = vpop.f32.mrb[157].mxu0  ;;  %v3006_v19 = vmax.f32 %v4828_v55, 0.0  ;;  %v3014_v55 = vmax.f32 %v5565_v32, 0.0  ;;  %v3019_v32 = vmax.f32 %v5582_v57, 0.0  ;;  %v3026_v57 = vmax.f32 %v5601_v22, 0.0 }
 0x21f   : > { %v3004_v0 = vmax.f32 %v2449_v53, 0.0  ;;  %v3278_v5 = vadd.f32 %v3277_v24, %v3003_v51  ;;  %v4829_v59 = vpop.f32.mrb[158].mxu0  ;;  %v3033_v22 = vmax.f32 %v5634_v13, 0.0  ;;  %v3038_v13 = vmax.f32 %v5636_v15, 0.0 }
 0x220   : > { %v2452_v12 = vpop.f32.mrb[159].mxu0  ;;  %v3007_v48 = vmax.f32 %v4829_v59, 0.0 }
 0x221   : > { %v3279_v63 = vadd.f32 %v3278_v5, %v3004_v0  ;;  %v3005_v18 = vmax.f32 %v2452_v12, 0.0  ;;  %v3015_v5 = vmax.f32 %v5570_v39, 0.0 }
 0x223   : > { %v3280_v58 = vadd.f32 %v3279_v63, %v3005_v18  ;;  %v3016_v63 = vmax.f32 %v5579_v54, 0.0  ;;  %v3022_v54 = vmax.f32 %v5589_v4, 0.0  ;;  %v3029_v4 = vmax.f32 %v5625_v61, 0.0 }
 0x224   : > { %v3357_v61 = vrot.slane %v5660_v41, 4 }
 0x225   : > { %v3281_v25 = vadd.f32 %v3280_v58, %v3006_v19  ;;  %v4832_v1 = vpop.f32.mrb[160].mxu0  ;;  %v3017_v19 = vmax.f32 %v5585_v62, 0.0  ;;  %v3018_v58 = vmax.f32 %v5577_v50, 0.0  ;;  %v3024_v62 = vmax.f32 %v5606_v28, 0.0 }
 0x226   : > { %v2465_v21 = vpop.f32.mrb[161].mxu0  ;;  %v3010_v37 = vmax.f32 %v4832_v1, 0.0  ;;  %v3020_v1 = vmax.f32 %v5591_v8, 0.0  ;;  %v3025_v50 = vmax.f32 %v5613_v40, 0.0  ;;  %v3027_v8 = vmax.f32 %v5610_v33, 0.0 }
 0x227   : > { %v3282_v17 = vadd.f32 %v3281_v25, %v3007_v48  ;;  %v4833_v26 = vpop.f32.mrb[162].mxu0  ;;  %v3008_v35 = vmax.f32 %v2465_v21, 0.0  ;;  %v3021_v21 = vmax.f32 %v5597_v16, 0.0  ;;  %v3028_v16 = vmax.f32 %v5620_v52, 0.0 }
 0x228   : > { %v2468_v34 = vpop.f32.mrb[163].mxu0  ;;  %v3011_v14 = vmax.f32 %v4833_v26, 0.0  ;;  %v3023_v26 = vmax.f32 %v5594_v11, 0.0  ;;  %v3030_v11 = vmax.f32 %v5618_v47, 0.0  ;;  %v3031_v28 = vmax.f32 %v5623_v56, 0.0 }
 0x229   : > { %v3283_v29 = vrot.slane %v3282_v17, 4  ;;  %v3009_v10 = vmax.f32 %v2468_v34, 0.0  ;;  %v3032_v40 = vmax.f32 %v5630_v6, 0.0  ;;  %v3034_v33 = vmax.f32 %v5628_v2, 0.0 }
 0x22a   : > { %v3035_v52 = vmax.f32 %v5632_v7, 0.0  ;;  %v3036_v47 = vmax.f32 %v5638_v20, 0.0  ;;  %v3039_v7 = vmax.f32 %v5640_v23, 0.0 }
 0x22b   : > { %v3284_v38 = vadd.f32 %v3283_v29, %v3282_v17  ;;  %v3289_v45 = vadd.f32 %v3009_v10, %v3008_v35 }
 0x22d   : > { %v3285_v9 = vrot.slane %v3284_v38, 2  ;;  %v3290_v49 = vadd.f32 %v3289_v45, %v3010_v37 }
 0x22f   : > { %v3286_v46 = vadd.f32 %v3285_v9, %v3284_v38  ;;  %v3291_v60 = vadd.f32 %v3290_v49, %v3011_v14 }
 0x231   : > { %v3287_v51 = vrot.slane %v3286_v46, 1  ;;  %v3292_v24 = vadd.f32 %v3291_v60, %v3012_v30 }
 0x233   : > { %v3288_v53 = vadd.f32 %v3287_v51, %v3286_v46  ;;  %v3293_v0 = vadd.f32 %v3292_v24, %v3013_v42  ;;  %v3394_v42 = vrot.slane %v5681_v43, 4  ;;  %v3037_v51 = vmax.f32 %v5642_v27, 0.0 }
 0x234   : > { %v3358_v24 = vadd.f32 %v3357_v61, %v5660_v41 }
 0x235   : > { %v3404_v59 = vmul.f32 0.00390625, %v3288_v53  ;;  %v3294_v12 = vadd.f32 %v3293_v0, %v3014_v55  ;;  %v3395_v2 = vadd.f32 %v3394_v42, %v5681_v43 }
 0x236   : > { %v3359_v0 = vrot.slane %v3358_v24, 2 }
 0x237   : > { %v5694_v18 = vsel %vm3422_vm6, %v3404_v59, %v5686_v3  ;;  %v3295_v36 = vadd.f32 %v3294_v12, %v3015_v5  ;;  %v3396_v5 = vrot.slane %v3395_v2, 2 }
 0x238   : > { %v3360_v12 = vadd.f32 %v3359_v0, %v3358_v24  ;;  %v5188_v0 = vld [vmem:[%s5902_s8 + $0x20] sm:$0xff]  }
 0x239   : > { %v3296_v44 = vadd.f32 %v3295_v36, %v3016_v63  ;;  %v3397_v63 = vadd.f32 %v3396_v5, %v3395_v2  ;;  %v5184_v2 = vld [vmem:[%s5902_s8] sm:$0xff]   ;;  %v5189_v5 = vld [vmem:[%s5902_s8 + $0x28] sm:$0xff]  }
 0x23a   : > { %v3361_v27 = vrot.slane %v3360_v12, 1 }
 0x23b   : > { %v3297_v48 = vadd.f32 %v3296_v44, %v3017_v19  ;;  %v3398_v44 = vrot.slane %v3397_v63, 1 }
 0x23d   : > { %v3298_v25 = vadd.f32 %v3297_v48, %v3018_v58  ;;  %v3362_v48 = vadd.f32 %v3361_v27, %v3360_v12  ;;  %v3399_v15 = vadd.f32 %v3398_v44, %v3397_v63 }
 0x23f   : > { %v3299_v39 = vadd.f32 %v3298_v25, %v3019_v32  ;;  %v3406_v23 = vmul.f32 0.00390625, %v3362_v48  ;;  %v3407_v25 = vmul.f32 0.00390625, %v3399_v15 }
 0x241   : > { %v3300_v17 = vadd.f32 %v3299_v39, %v3020_v1 }
 0x243   : > { %v3301_v3 = vadd.f32 %v3300_v17, %v3021_v21 }
 0x245   : > { %v3302_v34 = vadd.f32 %v3301_v3, %v3022_v54  ;;  %v5176_v54 = vld [vmem:[%s5899_s5] sm:$0xff]   ;;  %v5177_v3 = vld [vmem:[%s5899_s5 + $0x8] sm:$0xff]  }
 0x247   : > { %v3303_v29 = vadd.f32 %v3302_v34, %v3023_v26  ;;  %v5179_v26 = vld [vmem:[%s5899_s5 + $0x18] sm:$0xff]   ;;  %v5180_v34 = vld [vmem:[%s5899_s5 + $0x20] sm:$0xff]  }
 0x249   : > { %v3304_v35 = vadd.f32 %v3303_v29, %v3024_v62  ;;  %v5181_v62 = vld [vmem:[%s5899_s5 + $0x28] sm:$0xff]   ;;  %v5182_v29 = vld [vmem:[%s5899_s5 + $0x30] sm:$0xff]  }
 0x24b   : > { %v3305_v10 = vadd.f32 %v3304_v35, %v3025_v50  ;;  %v5183_v50 = vld [vmem:[%s5899_s5 + $0x38] sm:$0xff]  }
 0x24d   : > { %v3306_v38 = vadd.f32 %v3305_v10, %v3026_v57 }
 0x24f   : > { %v3307_v37 = vadd.f32 %v3306_v38, %v3027_v8 }
 0x251   : > { %v3308_v45 = vadd.f32 %v3307_v37, %v3028_v16 }
 0x253   : > { %v3309_v9 = vadd.f32 %v3308_v45, %v3029_v4 }
 0x255   : > { %v3310_v14 = vadd.f32 %v3309_v9, %v3030_v11 }
 0x257   : > { %v3311_v49 = vadd.f32 %v3310_v14, %v3031_v28 }
 0x259   : > { %v3312_v30 = vadd.f32 %v3311_v49, %v3032_v40 }
 0x25b   : > { %v3313_v46 = vadd.f32 %v3312_v30, %v3033_v22 }
 0x25d   : > { %v3314_v60 = vadd.f32 %v3313_v46, %v3034_v33 }
 0x25f   : > { %v3315_v56 = vadd.f32 %v3314_v60, %v3035_v52 }
 0x261   : > { %v3316_v6 = vadd.f32 %v3315_v56, %v3036_v47  ;;  %v4452_v47 = vld [vmem:[%s5897_s3] ss:$0 sm:$0xff] }
 0x262   : > { %v4453_v56 = vld [vmem:[%s5898_s4] ss:$0 sm:$0xff] }
 0x263   : > { %v3317_v55 = vadd.f32 %v3316_v6, %v3037_v51 }
 0x265   : > { %v3318_v53 = vadd.f32 %v3317_v55, %v3038_v13  ;;  %v5185_v55 = vld [vmem:[%s5902_s8 + $0x8] sm:$0xff]  }
 0x267   : > { %v3319_v59 = vadd.f32 %v3318_v53, %v3039_v7  ;;  %v5186_v7 = vld [vmem:[%s5902_s8 + $0x10] sm:$0xff]   ;;  %v5187_v53 = vld [vmem:[%s5902_s8 + $0x18] sm:$0xff]  }
 0x269   : > { %v3320_v20 = vrot.slane %v3319_v59, 4 }
 0x26b   : > { %v3321_v36 = vadd.f32 %v3320_v20, %v3319_v59  ;;  %v5190_v59 = vld [vmem:[%s5902_s8 + $0x30] sm:$0xff]   ;;  %v5191_v20 = vld [vmem:[%s5902_s8 + $0x38] sm:$0xff]  }
 0x26d   : > { %v3322_v19 = vrot.slane %v3321_v36, 2 }
 0x26f   : > { %v3323_v58 = vadd.f32 %v3322_v19, %v3321_v36 }
 0x271   : > { %v3324_v41 = vrot.slane %v3323_v58, 1 }
 0x273   : > { %v3325_v32 = vadd.f32 %v3324_v41, %v3323_v58 }
 0x275   : > { %v3405_v43 = vmul.f32 0.00390625, %v3325_v32 }
 0x277   : > { %v3425_v1 = vsel %vm3424_vm7, %v3405_v43, %v5694_v18  ;;  %v5178_v18 = vld [vmem:[%s5899_s5 + $0x10] sm:$0xff]  }
 0x278   : > { %v3427_v39 = vsel %vm3426_vm8, %v3406_v23, %v3425_v1 }
 0x279   : > { %v3429_v21 = vsel %vm3428_vm9, %v3407_v25, %v3427_v39 }
 0x27a   : > { %v3449_v17 = vpack.c.bf16 %v3429_v21, %v3429_v21 }
 0x27c   : > { %4943 = vmatmul.mubr.bf16.vlgmr.msra.gmra.mrb[92].mxu1 %v3449_v17 }
 0x27d   : > { %4962 = vmatprep.mubr.msk.bf16.mxu1 %vm5225_vm4, %v5224_v31  ;;  %4947 = vmatpush3.bf16.msra.mxu1 %v5176_v54 }
 0x27e   : > { %4948 = vmatprep.subr.bf16.mxu1 %v5224_v31 }
 0x281   : > { %4949 = vmatpush3.bf16.msra.mxu1 %v5177_v3 }
 0x282   : > { %4950 = vmatprep.subr.bf16.mxu1 %v5224_v31 }
 0x285   : > { %4951 = vmatpush3.bf16.msra.mxu1 %v5178_v18 }
 0x286   : > { %4952 = vmatprep.subr.bf16.mxu1 %v5224_v31 }
 0x289   : > { %4953 = vmatpush3.bf16.msra.mxu1 %v5179_v26 }
 0x28a   : > { %4954 = vmatprep.subr.bf16.mxu1 %v5224_v31 }
 0x28d   : > { %4955 = vmatpush3.bf16.msra.mxu1 %v5180_v34  ;;  %v4462_v34 = vld [vmem:[%s5900_s6] ss:$0 sm:$0xff] }
 0x28e   : > { %4956 = vmatprep.subr.bf16.mxu1 %v5224_v31 }
 0x291   : > { %4957 = vmatpush3.bf16.msra.mxu1 %v5181_v62 }
 0x292   : > { %4958 = vmatprep.subr.bf16.mxu1 %v5224_v31 }
 0x295   : > { %4959 = vmatpush3.bf16.msra.mxu1 %v5182_v29  ;;  %v4463_v29 = vld [vmem:[%s5901_s7] ss:$0 sm:$0xff] }
 0x296   : > { %4960 = vmatprep.subr.bf16.mxu1 %v5224_v31 }
 0x299   : > { %4961 = vmatpush3.bf16.msra.mxu1 %v5183_v50 }
 0x29a   : > { %4966 = vmatprep.subr.bf16.mxu1 %v5224_v31 }
 0x34f   : > { %v3532_v35 = vpop.f32.mrb[92].mxu1 }
 0x350   : > { %v3540_v57 = vrot.slane %v3532_v35, 4  ;;  %v4944_v10 = vpop.f32.mrb[93].mxu1 }
 0x351   : > { %v3535_v8 = vpop.f32.mrb[94].mxu1 }
 0x352   : > { %v3541_v38 = vadd.f32 %v3540_v57, %v3532_v35  ;;  %v4945_v16 = vpop.f32.mrb[95].mxu1  ;;  %v5192_v8 = vld [vmem:[%s5903_s9] sm:$0xff]  }
 0x353   : > { %v5194_v16 = vld [vmem:[%s5903_s9 + $0x10] sm:$0xff]  }
 0x354   : > { %v3542_v37 = vrot.slane %v3541_v38, 2 }
 0x356   : > { %v3543_v4 = vadd.f32 %v3542_v37, %v3541_v38  ;;  %v5193_v38 = vld [vmem:[%s5903_s9 + $0x8] sm:$0xff]   ;;  %v5195_v37 = vld [vmem:[%s5903_s9 + $0x18] sm:$0xff]  }
 0x358   : > { %v3544_v45 = vrot.slane %v3543_v4, 1 }
 0x35a   : > { %v3545_v11 = vadd.f32 %v3544_v45, %v3543_v4  ;;  %v5196_v4 = vld [vmem:[%s5903_s9 + $0x20] sm:$0xff]   ;;  %v5197_v45 = vld [vmem:[%s5903_s9 + $0x28] sm:$0xff]  }
 0x35c   : > { %v3547_v9 = vmul.f32 0.125, %v3545_v11  ;;  %v5198_v11 = vld [vmem:[%s5903_s9 + $0x30] sm:$0xff]  }
 0x35e   : > { %v3548_v28 = vsub.f32 %v3532_v35, %v3547_v9  ;;  %v5199_v9 = vld [vmem:[%s5903_s9 + $0x38] sm:$0xff]  }
 0x360   : > { %v3549_v14 = vmul.f32 %v3548_v28, %v3548_v28 }
 0x362   : > { %v3550_v40 = vrot.slane %v3549_v14, 4 }
 0x364   : > { %v3551_v49 = vadd.f32 %v3550_v40, %v3549_v14 }
 0x366   : > { %v3552_v22 = vrot.slane %v3551_v49, 2 }
 0x368   : > { %v3553_v30 = vadd.f32 %v3552_v22, %v3551_v49 }
 0x36a   : > { %v3554_v33 = vrot.slane %v3553_v30, 1 }
 0x36c   : > { %v3555_v46 = vadd.f32 %v3554_v33, %v3553_v30 }
 0x36e   : > { %v3556_v52 = vmul.f32 0.125, %v3555_v46 }
 0x370   : > { %v3557_v60 = vadd.f32 1e-05, %v3556_v52 }
 0x372   : > { %5208 = vrsqrt.f32 %v3557_v60 }
 0x37c   : > { %v5209_v61 = vpop.eup %5208 }
 0x37d   : > { %v3559_v42 = vmul.f32 %v5209_v61, %v3548_v28 }
 0x37f   : > { %v3566_v51 = vmul.f32 %v4452_v47, %v3559_v42 }
 0x381   : > { %v3573_v6 = vadd.f32 %v4453_v56, %v3566_v51 }
 0x383   : > { %v3574_v24 = vmax.f32 %v3573_v6, 0.0 }
 0x385   : > { %v3591_v13 = vpack.c.bf16 %v3574_v24, %v3574_v24 }
 0x387   : > { %4963 = vmatmul.mubr.bf16.vlgmr.msra.gmra.mrb[96].mxu1 %v3591_v13 }
 0x388   : > { %4982 = vmatprep.mubr.msk.bf16.mxu1 %vm5225_vm4, %v5224_v31  ;;  %4967 = vmatpush3.bf16.msra.mxu1 %v5184_v2 }
 0x389   : > { %4968 = vmatprep.subr.bf16.mxu1 %v5224_v31 }
 0x38c   : > { %4969 = vmatpush3.bf16.msra.mxu1 %v5185_v55 }
 0x38d   : > { %4970 = vmatprep.subr.bf16.mxu1 %v5224_v31 }
 0x390   : > { %4971 = vmatpush3.bf16.msra.mxu1 %v5186_v7 }
 0x391   : > { %4972 = vmatprep.subr.bf16.mxu1 %v5224_v31 }
 0x394   : > { %4973 = vmatpush3.bf16.msra.mxu1 %v5187_v53 }
 0x395   : > { %4974 = vmatprep.subr.bf16.mxu1 %v5224_v31 }
 0x398   : > { %4975 = vmatpush3.bf16.msra.mxu1 %v5188_v0 }
 0x399   : > { %4976 = vmatprep.subr.bf16.mxu1 %v5224_v31 }
 0x39c   : > { %4977 = vmatpush3.bf16.msra.mxu1 %v5189_v5 }
 0x39d   : > { %4978 = vmatprep.subr.bf16.mxu1 %v5224_v31 }
 0x3a0   : > { %4979 = vmatpush3.bf16.msra.mxu1 %v5190_v59  ;;  %v5200_v59 = vld [vmem:[%s5906_s12] sm:$0xff]  }
 0x3a1   : > { %4980 = vmatprep.subr.bf16.mxu1 %v5224_v31 }
 0x3a4   : > { %4981 = vmatpush3.bf16.msra.mxu1 %v5191_v20  ;;  %v5201_v20 = vld [vmem:[%s5906_s12 + $0x8] sm:$0xff]  }
 0x3a5   : > { %4986 = vmatprep.subr.bf16.mxu1 %v5224_v31 }
 0x45a   : > { %v3674_v12 = vpop.f32.mrb[96].mxu1 }
 0x45b   : > { %v3682_v63 = vrot.slane %v3674_v12, 4  ;;  %v4964_v36 = vpop.f32.mrb[97].mxu1 }
 0x45c   : > { %v3677_v19 = vpop.f32.mrb[98].mxu1  ;;  %v5204_v36 = vld [vmem:[%s5906_s12 + $0x20] sm:$0xff]  }
 0x45d   : > { %v3683_v27 = vadd.f32 %v3682_v63, %v3674_v12  ;;  %v4965_v44 = vpop.f32.mrb[99].mxu1  ;;  %v5203_v63 = vld [vmem:[%s5906_s12 + $0x18] sm:$0xff]   ;;  %v5205_v19 = vld [vmem:[%s5906_s12 + $0x28] sm:$0xff]  }
 0x45e   : > { %v5207_v44 = vld [vmem:[%s5906_s12 + $0x38] sm:$0xff]  }
 0x45f   : > { %v3684_v58 = vrot.slane %v3683_v27, 2 }
 0x461   : > { %v3685_v41 = vadd.f32 %v3684_v58, %v3683_v27  ;;  %v5206_v27 = vld [vmem:[%s5906_s12 + $0x30] sm:$0xff]  }
 0x463   : > { %v3686_v48 = vrot.slane %v3685_v41, 1 }
 0x465   : > { %v3687_v15 = vadd.f32 %v3686_v48, %v3685_v41 }
 0x467   : > { %v3688_v32 = vmul.f32 0.125, %v3687_v15 }
 0x469   : > { %v3689_v43 = vsub.f32 %v3674_v12, %v3688_v32  ;;  %v5202_v12 = vld [vmem:[%s5906_s12 + $0x10] sm:$0xff]  }
 0x46b   : > { %v3690_v23 = vmul.f32 %v3689_v43, %v3689_v43 }
 0x46d   : > { %v3691_v25 = vrot.slane %v3690_v23, 4 }
 0x46f   : > { %v3692_v1 = vadd.f32 %v3691_v25, %v3690_v23 }
 0x471   : > { %v3693_v39 = vrot.slane %v3692_v1, 2 }
 0x473   : > { %v3694_v21 = vadd.f32 %v3693_v39, %v3692_v1 }
 0x475   : > { %v3695_v17 = vrot.slane %v3694_v21, 1 }
 0x477   : > { %v3696_v54 = vadd.f32 %v3695_v17, %v3694_v21 }
 0x479   : > { %v3697_v3 = vmul.f32 0.125, %v3696_v54 }
 0x47b   : > { %v3698_v18 = vadd.f32 1e-05, %v3697_v3 }
 0x47d   : > { %5210 = vrsqrt.f32 %v3698_v18 }
 0x487   : > { %v5211_v26 = vpop.eup %5210 }
 0x488   : > { %v3700_v62 = vmul.f32 %v5211_v26, %v3689_v43 }
 0x48a   : > { %v3707_v50 = vmul.f32 %v4462_v34, %v3700_v62 }
 0x48c   : > { %v3714_v35 = vadd.f32 %v4463_v29, %v3707_v50 }
 0x48e   : > { %v3715_v57 = vmax.f32 %v3714_v35, 0.0 }
 0x490   : > { %v3732_v10 = vpack.c.bf16 %v3715_v57, %v3715_v57  ;;  %v4480_v57 = vld [vmem:[%s5904_s10] ss:$0 sm:$0xff] }
 0x492   : > { %4983 = vmatmul.mubr.bf16.vlgmr.msra.gmra.mrb[100].mxu1 %v3732_v10 }
 0x493   : > { %5002 = vmatprep.mubr.msk.bf16.mxu1 %vm5225_vm4, %v5224_v31  ;;  %4987 = vmatpush3.bf16.msra.mxu1 %v5192_v8  ;;  %v4481_v8 = vld [vmem:[%s5905_s11] ss:$0 sm:$0xff] }
 0x494   : > { %4988 = vmatprep.subr.bf16.mxu1 %v5224_v31 }
 0x497   : > { %4989 = vmatpush3.bf16.msra.mxu1 %v5193_v38 }
 0x498   : > { %4990 = vmatprep.subr.bf16.mxu1 %v5224_v31 }
 0x49b   : > { %4991 = vmatpush3.bf16.msra.mxu1 %v5194_v16 }
 0x49c   : > { %4992 = vmatprep.subr.bf16.mxu1 %v5224_v31 }
 0x49f   : > { %4993 = vmatpush3.bf16.msra.mxu1 %v5195_v37 }
 0x4a0   : > { %4994 = vmatprep.subr.bf16.mxu1 %v5224_v31 }
 0x4a3   : > { %4995 = vmatpush3.bf16.msra.mxu1 %v5196_v4 }
 0x4a4   : > { %4996 = vmatprep.subr.bf16.mxu1 %v5224_v31 }
 0x4a7   : > { %4997 = vmatpush3.bf16.msra.mxu1 %v5197_v45  ;;  %v4482_v45 = vld [vmem:[%s5907_s13] ss:$0 sm:$0xff] }
 0x4a8   : > { %4998 = vmatprep.subr.bf16.mxu1 %v5224_v31 }
 0x4ab   : > { %4999 = vmatpush3.bf16.msra.mxu1 %v5198_v11 }
 0x4ac   : > { %5000 = vmatprep.subr.bf16.mxu1 %v5224_v31 }
 0x4af   : > { %5001 = vmatpush3.bf16.msra.mxu1 %v5199_v9 }
 0x4b0   : > { %5006 = vmatprep.subr.bf16.mxu1 %v5224_v31 }
 0x565   : > { %v3815_v28 = vpop.f32.mrb[100].mxu1 }
 0x566   : > { %v3821_v14 = vrot.slane %v3815_v28, 4  ;;  %v4984_v40 = vpop.f32.mrb[101].mxu1 }
 0x567   : > { %v3818_v49 = vpop.f32.mrb[102].mxu1 }
 0x568   : > { %v3822_v22 = vadd.f32 %v3821_v14, %v3815_v28  ;;  %v4985_v30 = vpop.f32.mrb[103].mxu1 }
 0x56a   : > { %v3823_v33 = vrot.slane %v3822_v22, 2 }
 0x56c   : > { %v3824_v46 = vadd.f32 %v3823_v33, %v3822_v22 }
 0x56e   : > { %v3825_v52 = vrot.slane %v3824_v46, 1 }
 0x570   : > { %v3826_v60 = vadd.f32 %v3825_v52, %v3824_v46 }
 0x572   : > { %v3827_v61 = vmul.f32 0.125, %v3826_v60 }
 0x574   : > { %v3828_v47 = vsub.f32 %v3815_v28, %v3827_v61 }
 0x576   : > { %v3829_v42 = vmul.f32 %v3828_v47, %v3828_v47 }
 0x578   : > { %v3830_v56 = vrot.slane %v3829_v42, 4 }
 0x57a   : > { %v3831_v51 = vadd.f32 %v3830_v56, %v3829_v42 }
 0x57c   : > { %v3832_v6 = vrot.slane %v3831_v51, 2 }
 0x57e   : > { %v3833_v24 = vadd.f32 %v3832_v6, %v3831_v51 }
 0x580   : > { %v3834_v13 = vrot.slane %v3833_v24, 1 }
 0x582   : > { %v3835_v2 = vadd.f32 %v3834_v13, %v3833_v24 }
 0x584   : > { %v3836_v55 = vmul.f32 0.125, %v3835_v2 }
 0x586   : > { %v3837_v7 = vadd.f32 1e-05, %v3836_v55 }
 0x588   : > { %5212 = vrsqrt.f32 %v3837_v7 }
 0x592   : > { %v5213_v53 = vpop.eup %5212 }
 0x593   : > { %v3839_v0 = vmul.f32 %v5213_v53, %v3828_v47 }
 0x595   : > { %v3857_v5 = vpack.c.bf16 %v3839_v0, %v3839_v0  ;;  %3840 = vst [vmem:[%s503_s23] sm:$0xff] %v3839_v0 }
 0x597   : > { %5003 = vmatmul.mubr.bf16.vlgmr.msra.gmra.mrb[104].mxu1 %v3857_v5 }
 0x598   : > { %5022 = vmatprep.mubr.msk.bf16.mxu1 %vm5225_vm4, %v5224_v31  ;;  %5007 = vmatpush3.bf16.msra.mxu1 %v5200_v59 }
 0x599   : > { %5008 = vmatprep.subr.bf16.mxu1 %v5224_v31 }
 0x59c   : > { %5009 = vmatpush3.bf16.msra.mxu1 %v5201_v20 }
 0x59d   : > { %5010 = vmatprep.subr.bf16.mxu1 %v5224_v31 }
 0x5a0   : > { %5011 = vmatpush3.bf16.msra.mxu1 %v5202_v12 }
 0x5a1   : > { %5012 = vmatprep.subr.bf16.mxu1 %v5224_v31 }
 0x5a4   : > { %5013 = vmatpush3.bf16.msra.mxu1 %v5203_v63 }
 0x5a5   : > { %5014 = vmatprep.subr.bf16.mxu1 %v5224_v31 }
 0x5a8   : > { %5015 = vmatpush3.bf16.msra.mxu1 %v5204_v36 }
 0x5a9   : > { %5016 = vmatprep.subr.bf16.mxu1 %v5224_v31 }
 0x5ac   : > { %5017 = vmatpush3.bf16.msra.mxu1 %v5205_v19 }
 0x5ad   : > { %5018 = vmatprep.subr.bf16.mxu1 %v5224_v31 }
 0x5b0   : > { %5019 = vmatpush3.bf16.msra.mxu1 %v5206_v27 }
 0x5b1   : > { %5020 = vmatprep.subr.bf16.mxu1 %v5224_v31 }
 0x5b4   : > { %5021 = vmatpush3.bf16.msra.mxu1 %v5207_v44 }
 0x66a   : > { %v3940_v58 = vpop.f32.mrb[104].mxu1 }
 0x66b   : > { %v3948_v41 = vrot.slane %v3940_v58, 4  ;;  %v5004_v48 = vpop.f32.mrb[105].mxu1 }
 0x66c   : > { %v3943_v15 = vpop.f32.mrb[106].mxu1 }
 0x66d   : > { %v3949_v32 = vadd.f32 %v3948_v41, %v3940_v58  ;;  %v5005_v43 = vpop.f32.mrb[107].mxu1 }
 0x66f   : > { %v3950_v23 = vrot.slane %v3949_v32, 2 }
 0x671   : > { %v3951_v25 = vadd.f32 %v3950_v23, %v3949_v32 }
 0x673   : > { %v3952_v1 = vrot.slane %v3951_v25, 1 }
 0x675   : > { %v3953_v39 = vadd.f32 %v3952_v1, %v3951_v25 }
 0x677   : > { %v3954_v21 = vmul.f32 0.125, %v3953_v39 }
 0x679   : > { %v3955_v17 = vsub.f32 %v3940_v58, %v3954_v21 }
 0x67b   : > { %v3956_v54 = vmul.f32 %v3955_v17, %v3955_v17 }
 0x67d   : > { %v3957_v3 = vrot.slane %v3956_v54, 4 }
 0x67f   : > { %v3958_v18 = vadd.f32 %v3957_v3, %v3956_v54 }
 0x681   : > { %v3959_v26 = vrot.slane %v3958_v18, 2 }
 0x683   : > { %v3960_v34 = vadd.f32 %v3959_v26, %v3958_v18 }
 0x685   : > { %v3961_v31 = vrot.slane %v3960_v34, 1 }
 0x687   : > { %v3962_v62 = vadd.f32 %v3961_v31, %v3960_v34 }
 0x689   : > { %v3963_v29 = vmul.f32 0.125, %v3962_v62 }
 0x68b   : > { %v3964_v50 = vadd.f32 1e-05, %v3963_v29 }
 0x68d   : > { %5214 = vrsqrt.f32 %v3964_v50 }
 0x697   : > { %v5215_v35 = vpop.eup %5214 }
 0x698   : > { %v3966_v10 = vmul.f32 %v5215_v35, %v3955_v17 }
 0x69a   : > { %v3973_v38 = vmul.f32 %v4480_v57, %v3966_v10 }
 0x69c   : > { %v3980_v16 = vadd.f32 %v4481_v8, %v3973_v38 }
 0x69e   : > { %v3981_v37 = vmax.f32 %v3980_v16, 0.0 }
 0x6a0   : > { %v3998_v4 = vpack.c.bf16 %v3981_v37, %v3981_v37 }
 0x6a2   : > { %5023 = vmatmul.mubr.bf16.vlgmr.msra.gmra.mrb[108].mxu1 %v3998_v4 }
 0x775   : > { %v4088_v11 = vpop.f32.mrb[108].mxu1 }
 0x776   : > { %v4089_v9 = vadd.f32 %v4482_v45, %v4088_v11  ;;  %v5024_v28 = vpop.f32.mrb[109].mxu1 }
 0x777   : > { %v4091_v14 = vpop.f32.mrb[110].mxu1 }
 0x778   : > { %4094 = vst [vmem:[%s499_s24] sm:$0xff] %v4089_v9  ;;  %v5025_v40 = vpop.f32.mrb[111].mxu1 }
 0x779 PF: > { %s26_s18 = sadd.s32 1, %s5222_s18  }
 0x77a   : > { %p23_p4 = scmp.ge.s32.totalorder %s26_s18, 4  }
 0x77c   :  { %25 = sbr.rel (!%p23_p4) target bundleno = 1 (0x1), region = 118 }

</bundles_post_ra>
